<compile_context>
chip_gen: v6e
topology: v6e:2x2x1
jax: 0.10.0
libtpu: 0.0.40
codegen_flags: <defaults>
</compile_context>

<pallas_src>
import jax
import jax.numpy as jnp
from jax.experimental import pallas as pl
from jax.experimental.pallas import tpu as pltpu

EXPERT_DIM = 128
N_MELS = 128
CONV_CHANNELS = (64, 128)
LSTM_HIDDEN = EXPERT_DIM // 2
LSTM_LAYERS = 2


# ---------------------------------------------------------------------------
# Kernel 1: fused conv1 + ReLU + conv2 + ReLU  (Conv1d over time, k=3, pad=1)
# ---------------------------------------------------------------------------
def _conv_stack_kernel(xp_ref, w1_ref, b1_ref, w2_ref, b2_ref, o_ref):
    # xp_ref: [1, T+2, n_mels]  (input, zero-padded by 1 on each side of time)
    # w1_ref: [3, n_mels, C1]   b1_ref: [1, C1]
    # w2_ref: [3, C1, C2]       b2_ref: [1, C2]
    # o_ref : [1, T, C2]
    T = o_ref.shape[1]
    C1 = w1_ref.shape[2]

    xp = xp_ref[0]                                            # [T+2, n_mels]

    h1 = (jnp.dot(xp[0:T, :],     w1_ref[0], preferred_element_type=jnp.float32)
          + jnp.dot(xp[1:T + 1, :], w1_ref[1], preferred_element_type=jnp.float32)
          + jnp.dot(xp[2:T + 2, :], w1_ref[2], preferred_element_type=jnp.float32)
          + b1_ref[...])
    h1 = jnp.maximum(h1, 0.0)                                 # ReLU

    zero = jnp.zeros((1, C1), jnp.float32)
    h1p = jnp.concatenate([zero, h1, zero], axis=0)           # [T+2, C1]

    h2 = (jnp.dot(h1p[0:T, :],     w2_ref[0], preferred_element_type=jnp.float32)
          + jnp.dot(h1p[1:T + 1, :], w2_ref[1], preferred_element_type=jnp.float32)
          + jnp.dot(h1p[2:T + 2, :], w2_ref[2], preferred_element_type=jnp.float32)
          + b2_ref[...])
    h2 = jnp.maximum(h2, 0.0)                                 # ReLU

    o_ref[0] = h2.astype(o_ref.dtype)


def conv_stack(x, w1, b1, w2, b2):
    """x: [B, T, n_mels] -> [B, T, C2] (conv1+relu+conv2+relu, channels-last)."""
    B, T, n_mels = x.shape
    C1 = w1.shape[2]
    C2 = w2.shape[2]
    xp = jnp.pad(x, ((0, 0), (1, 1), (0, 0)))                 # pad the time axis

    flops = 2 * B * T * 3 * (n_mels * C1 + C1 * C2)
    bytes_accessed = 4 * (B * (T + 2) * n_mels + B * T * C2
                          + 3 * (n_mels * C1 + C1 * C2) + C1 + C2)

    return pl.pallas_call(
        _conv_stack_kernel,
        out_shape=jax.ShapeDtypeStruct((B, T, C2), jnp.float32),
        grid=(B,),
        in_specs=[
            pl.BlockSpec((1, T + 2, n_mels), lambda b: (b, 0, 0)),
            pl.BlockSpec((3, n_mels, C1), lambda b: (0, 0, 0)),
            pl.BlockSpec((1, C1), lambda b: (0, 0)),
            pl.BlockSpec((3, C1, C2), lambda b: (0, 0, 0)),
            pl.BlockSpec((1, C2), lambda b: (0, 0)),
        ],
        out_specs=pl.BlockSpec((1, T, C2), lambda b: (b, 0, 0)),
        compiler_params=pltpu.CompilerParams(dimension_semantics=("parallel",)),
        cost_estimate=pl.CostEstimate(flops=int(flops), transcendentals=0,
                                      bytes_accessed=int(bytes_accessed)),
    )(xp, w1, b1, w2, b2)


# ---------------------------------------------------------------------------
# Kernel 2: one bidirectional LSTM layer (both directions fused, per batch row)
# ---------------------------------------------------------------------------
def _bilstm_layer_kernel(x_ref, wih_f_ref, whh_f_ref, b_f_ref,
                         wih_b_ref, whh_b_ref, b_b_ref, o_ref,
                         xg_f_scr, xg_b_scr, out_f_scr, out_b_scr):
    # x_ref  : [1, T, Cin]
    # wih_*  : [Cin, 4H]   whh_*: [H, 4H]   b_*: [1, 4H]   (b = b_ih + b_hh)
    # o_ref  : [1, T, 2H]
    # scratch: xg_* [T, 4H] (hoisted input projections), out_* [T, H]
    T = x_ref.shape[1]
    H = whh_f_ref.shape[0]

    x = x_ref[0]                                              # [T, Cin]

    # Hoist the large input projections out of the sequential recurrence.
    xg_f_scr[...] = (jnp.dot(x, wih_f_ref[...], preferred_element_type=jnp.float32)
                     + b_f_ref[...])
    xg_b_scr[...] = (jnp.dot(x, wih_b_ref[...], preferred_element_type=jnp.float32)
                     + b_b_ref[...])

    whh_f = whh_f_ref[...]                                    # [H, 4H]
    whh_b = whh_b_ref[...]

    def cell(gates, c_prev):
        i = jax.nn.sigmoid(gates[:, 0:H])
        f = jax.nn.sigmoid(gates[:, H:2 * H])
        g = jnp.tanh(gates[:, 2 * H:3 * H])
        o = jax.nn.sigmoid(gates[:, 3 * H:4 * H])
        c = f * c_prev + i * g
        h = o * jnp.tanh(c)
        return h, c

    def fwd_step(t, carry):
        h, c = carry
        gates = (xg_f_scr[pl.ds(t, 1), :]
                 + jnp.dot(h, whh_f, preferred_element_type=jnp.float32))
        h, c = cell(gates, c)
        out_f_scr[pl.ds(t, 1), :] = h
        return (h, c)

    def bwd_step(s, carry):
        h, c = carry
        t = T - 1 - s
        gates = (xg_b_scr[pl.ds(t, 1), :]
                 + jnp.dot(h, whh_b, preferred_element_type=jnp.float32))
        h, c = cell(gates, c)
        out_b_scr[pl.ds(t, 1), :] = h
        return (h, c)

    init = (jnp.zeros((1, H), jnp.float32), jnp.zeros((1, H), jnp.float32))
    jax.lax.fori_loop(0, T, fwd_step, init)
    jax.lax.fori_loop(0, T, bwd_step, init)

    # Single lane-dense [T, 2H=128] store of the concatenated directions.
    o_ref[0] = jnp.concatenate([out_f_scr[...], out_b_scr[...]],
                               axis=-1).astype(o_ref.dtype)


def bilstm_layer(x, wih_f, whh_f, b_f, wih_b, whh_b, b_b):
    """x: [B, T, Cin] -> [B, T, 2H] (one bidirectional LSTM layer)."""
    B, T, Cin = x.shape
    H = whh_f.shape[0]

    flops = 2 * B * T * 2 * (Cin * 4 * H + H * 4 * H)
    transcendentals = B * T * 2 * 5 * H                       # 3 sigmoid + 2 tanh per cell
    bytes_accessed = 4 * (B * T * Cin + B * T * 2 * H
                          + 2 * (Cin * 4 * H + H * 4 * H + 4 * H))

    return pl.pallas_call(
        _bilstm_layer_kernel,
        out_shape=jax.ShapeDtypeStruct((B, T, 2 * H), jnp.float32),
        grid=(B,),
        in_specs=[
            pl.BlockSpec((1, T, Cin), lambda b: (b, 0, 0)),
            pl.BlockSpec((Cin, 4 * H), lambda b: (0, 0)),
            pl.BlockSpec((H, 4 * H), lambda b: (0, 0)),
            pl.BlockSpec((1, 4 * H), lambda b: (0, 0)),
            pl.BlockSpec((Cin, 4 * H), lambda b: (0, 0)),
            pl.BlockSpec((H, 4 * H), lambda b: (0, 0)),
            pl.BlockSpec((1, 4 * H), lambda b: (0, 0)),
        ],
        out_specs=pl.BlockSpec((1, T, 2 * H), lambda b: (b, 0, 0)),
        scratch_shapes=[
            pltpu.VMEM((T, 4 * H), jnp.float32),   # x @ W_ih (forward)
            pltpu.VMEM((T, 4 * H), jnp.float32),   # x @ W_ih (backward)
            pltpu.VMEM((T, H), jnp.float32),       # forward hidden states
            pltpu.VMEM((T, H), jnp.float32),       # backward hidden states
        ],
        compiler_params=pltpu.CompilerParams(dimension_semantics=("parallel",)),
        cost_estimate=pl.CostEstimate(flops=int(flops),
                                      transcendentals=int(transcendentals),
                                      bytes_accessed=int(bytes_accessed)),
    )(x, wih_f, whh_f, b_f, wih_b, whh_b, b_b)


# ---------------------------------------------------------------------------
# Full forward pass
# ---------------------------------------------------------------------------
@jax.jit
def audio_expert_forward(x, params):
    """x: [B, T, n_mels] f32 -> [B, T, EXPERT_DIM] f32."""
    h = conv_stack(x, params["conv1_w"], params["conv1_b"],
                   params["conv2_w"], params["conv2_b"])
    for lp in params["lstm"]:
        h = bilstm_layer(h, lp["wih_f"], lp["whh_f"], lp["b_f"],
                         lp["wih_b"], lp["whh_b"], lp["b_b"])
    return h


# ---------------------------------------------------------------------------
# Parameter init (torch-like uniform) and a plain-JAX reference for checking
# ---------------------------------------------------------------------------
def _uniform(key, shape, fan_in):
    bound = 1.0 / (fan_in ** 0.5)
    return jax.random.uniform(key, shape, jnp.float32, -bound, bound)


def init_params(key, n_mels=N_MELS):
    C1, C2, H = CONV_CHANNELS[0], CONV_CHANNELS[1], LSTM_HIDDEN
    keys = iter(jax.random.split(key, 32))
    params = {
        "conv1_w": _uniform(next(keys), (3, n_mels, C1), 3 * n_mels),
        "conv1_b": _uniform(next(keys), (1, C1), 3 * n_mels),
        "conv2_w": _uniform(next(keys), (3, C1, C2), 3 * C1),
        "conv2_b": _uniform(next(keys), (1, C2), 3 * C1),
        "lstm": [],
    }
    in_size = C2
    for _ in range(LSTM_LAYERS):
        layer = {}
        for d in ("f", "b"):
            layer[f"wih_{d}"] = _uniform(next(keys), (in_size, 4 * H), H)
            layer[f"whh_{d}"] = _uniform(next(keys), (H, 4 * H), H)
            layer[f"b_{d}"] = _uniform(next(keys), (1, 4 * H), H)   # b_ih + b_hh
        params["lstm"].append(layer)
        in_size = 2 * H
    return params


def _lstm_dir_ref(x, wih, whh, b):
    B, T, _ = x.shape
    H = whh.shape[0]

    def step(carry, xt):
        h, c = carry
        gates = xt @ wih + h @ whh + b
        i = jax.nn.sigmoid(gates[:, 0:H])
        f = jax.nn.sigmoid(gates[:, H:2 * H])
        g = jnp.tanh(gates[:, 2 * H:3 * H])
        o = jax.nn.sigmoid(gates[:, 3 * H:4 * H])
        c = f * c + i * g
        h = o * jnp.tanh(c)
        return (h, c), h

    init = (jnp.zeros((B, H), jnp.float32), jnp.zeros((B, H), jnp.float32))
    _, ys = jax.lax.scan(step, init, jnp.swapaxes(x, 0, 1))
    return jnp.swapaxes(ys, 0, 1)


def ref_forward(x, params):
    T = x.shape[1]
    xp = jnp.pad(x, ((0, 0), (1, 1), (0, 0)))
    w1, b1 = params["conv1_w"], params["conv1_b"]
    h1 = sum(xp[:, k:k + T, :] @ w1[k] for k in range(3)) + b1
    h1 = jnp.maximum(h1, 0.0)
    h1p = jnp.pad(h1, ((0, 0), (1, 1), (0, 0)))
    w2, b2 = params["conv2_w"], params["conv2_b"]
    h2 = sum(h1p[:, k:k + T, :] @ w2[k] for k in range(3)) + b2
    h = jnp.maximum(h2, 0.0)
    for lp in params["lstm"]:
        fwd = _lstm_dir_ref(h, lp["wih_f"], lp["whh_f"], lp["b_f"])
        bwd = jnp.flip(_lstm_dir_ref(jnp.flip(h, 1), lp["wih_b"], lp["whh_b"], lp["b_b"]), 1)
        h = jnp.concatenate([fwd, bwd], axis=-1)
    return h


if __name__ == "__main__":
    key = jax.random.PRNGKey(0)
    k_x, k_p = jax.random.split(key)

    B, T = 2, 8
    x = jax.random.normal(k_x, (B, T, N_MELS), jnp.float32)
    params = init_params(k_p)

    out = audio_expert_forward(x, params)
    out = jax.block_until_ready(out)

    ref = ref_forward(x, params)
    assert out.shape == (B, T, EXPERT_DIM), out.shape
    assert jnp.allclose(out, ref, atol=1e-3, rtol=1e-3), float(jnp.max(jnp.abs(out - ref)))

    print("KERNEL_OK")
</pallas_src>

<mosaic_0001>
module attributes {stable_mosaic.version = 11 : i64} {
  func.func @_bilstm_layer_kernel(%arg0: i32, %arg1: memref<1x8x128xf32, #tpu.memory_space<vmem>>, %arg2: memref<128x256xf32, #tpu.memory_space<vmem>>, %arg3: memref<64x256xf32, #tpu.memory_space<vmem>>, %arg4: memref<1x256xf32, #tpu.memory_space<vmem>>, %arg5: memref<128x256xf32, #tpu.memory_space<vmem>>, %arg6: memref<64x256xf32, #tpu.memory_space<vmem>>, %arg7: memref<1x256xf32, #tpu.memory_space<vmem>>, %arg8: memref<1x8x128xf32, #tpu.memory_space<vmem>>, %arg9: memref<8x256xf32, #tpu.memory_space<vmem>>, %arg10: memref<8x256xf32, #tpu.memory_space<vmem>>, %arg11: memref<8x64xf32, #tpu.memory_space<vmem>>, %arg12: memref<8x64xf32, #tpu.memory_space<vmem>>) attributes {dimension_semantics = [#tpu.dimension_semantics<parallel>], iteration_bounds = array<i64: 2>, scalar_prefetch = 0 : i64, scratch_operands = 4 : i64, tpu.core_type = #tpu.core_type<tc>, window_params = [{transform_indices = @transform_0, window_bounds = array<i64: 1, 8, 128>}, {pipeline_mode = #tpu.pipeline_mode<synchronous>, transform_indices = @transform_1, window_bounds = array<i64: 128, 256>}, {pipeline_mode = #tpu.pipeline_mode<synchronous>, transform_indices = @transform_2, window_bounds = array<i64: 64, 256>}, {pipeline_mode = #tpu.pipeline_mode<synchronous>, transform_indices = @transform_3, window_bounds = array<i64: 1, 256>}, {pipeline_mode = #tpu.pipeline_mode<synchronous>, transform_indices = @transform_4, window_bounds = array<i64: 128, 256>}, {pipeline_mode = #tpu.pipeline_mode<synchronous>, transform_indices = @transform_5, window_bounds = array<i64: 64, 256>}, {pipeline_mode = #tpu.pipeline_mode<synchronous>, transform_indices = @transform_6, window_bounds = array<i64: 1, 256>}, {transform_indices = @transform_7, window_bounds = array<i64: 1, 8, 128>}]} {
    %c0 = arith.constant 0 : index
    %c0_0 = arith.constant 0 : index
    %c0_1 = arith.constant 0 : index
    %0 = vector.load %arg1[%c0, %c0_0, %c0_1] : memref<1x8x128xf32, #tpu.memory_space<vmem>>, vector<1x8x128xf32>
    %1 = vector.shape_cast %0 : vector<1x8x128xf32> to vector<8x128xf32>
    %c0_2 = arith.constant 0 : index
    %c0_3 = arith.constant 0 : index
    %2 = vector.load %arg2[%c0_2, %c0_3] : memref<128x256xf32, #tpu.memory_space<vmem>>, vector<128x256xf32>
    %cst = arith.constant dense<0.000000e+00> : vector<8x256xf32>
    %3 = tpu.matmul %1, %2, %cst {dimension_numbers = #tpu.dot_dimension_numbers<[1], [0], [0], [1], [0, 0, 1, 1], [], []>} : vector<8x128xf32>, vector<128x256xf32>, vector<8x256xf32> -> vector<8x256xf32>
    %c0_4 = arith.constant 0 : index
    %c0_5 = arith.constant 0 : index
    %4 = vector.load %arg4[%c0_4, %c0_5] : memref<1x256xf32, #tpu.memory_space<vmem>>, vector<1x256xf32>
    %5 = vector.broadcast %4 : vector<1x256xf32> to vector<8x256xf32>
    %6 = arith.addf %3, %5 : vector<8x256xf32>
    %c0_6 = arith.constant 0 : index
    %c0_7 = arith.constant 0 : index
    %7 = vector.load %arg9[%c0_6, %c0_7] : memref<8x256xf32, #tpu.memory_space<vmem>>, vector<8x256xf32>
    tpu.vector_store %arg9[%c0_6, %c0_7], %6 {strides = array<i32>} : memref<8x256xf32, #tpu.memory_space<vmem>>, vector<8x256xf32>,
    %c0_8 = arith.constant 0 : index
    %c0_9 = arith.constant 0 : index
    %8 = vector.load %arg5[%c0_8, %c0_9] : memref<128x256xf32, #tpu.memory_space<vmem>>, vector<128x256xf32>
    %cst_10 = arith.constant dense<0.000000e+00> : vector<8x256xf32>
    %9 = tpu.matmul %1, %8, %cst_10 {dimension_numbers = #tpu.dot_dimension_numbers<[1], [0], [0], [1], [0, 0, 1, 1], [], []>} : vector<8x128xf32>, vector<128x256xf32>, vector<8x256xf32> -> vector<8x256xf32>
    %c0_11 = arith.constant 0 : index
    %c0_12 = arith.constant 0 : index
    %10 = vector.load %arg7[%c0_11, %c0_12] : memref<1x256xf32, #tpu.memory_space<vmem>>, vector<1x256xf32>
    %11 = vector.broadcast %10 : vector<1x256xf32> to vector<8x256xf32>
    %12 = arith.addf %9, %11 : vector<8x256xf32>
    %c0_13 = arith.constant 0 : index
    %c0_14 = arith.constant 0 : index
    %13 = vector.load %arg10[%c0_13, %c0_14] : memref<8x256xf32, #tpu.memory_space<vmem>>, vector<8x256xf32>
    tpu.vector_store %arg10[%c0_13, %c0_14], %12 {strides = array<i32>} : memref<8x256xf32, #tpu.memory_space<vmem>>, vector<8x256xf32>,
    %c0_15 = arith.constant 0 : index
    %c0_16 = arith.constant 0 : index
    %14 = vector.load %arg3[%c0_15, %c0_16] : memref<64x256xf32, #tpu.memory_space<vmem>>, vector<64x256xf32>
    %c0_17 = arith.constant 0 : index
    %c0_18 = arith.constant 0 : index
    %15 = vector.load %arg6[%c0_17, %c0_18] : memref<64x256xf32, #tpu.memory_space<vmem>>, vector<64x256xf32>
    %cst_19 = arith.constant 0.000000e+00 : f32
    %16 = vector.broadcast %cst_19 : f32 to vector<1x64xf32>
    %cst_20 = arith.constant 0.000000e+00 : f32
    %17 = vector.broadcast %cst_20 : f32 to vector<1x64xf32>
    %c0_i32 = arith.constant 0 : i32
    %c8_i32 = arith.constant 8 : i32
    %18 = arith.addi %c0_i32, %c8_i32 : i32
    %c1_i32 = arith.constant 1 : i32
    %19:2 = scf.for %arg13 = %c0_i32 to %18 step %c1_i32 iter_args(%arg14 = %16, %arg15 = %17) -> (vector<1x64xf32>, vector<1x64xf32>)  : i32 {
      %28 = arith.index_cast %arg13 : i32 to index
      %c0_33 = arith.constant 0 : index
      %29 = vector.load %arg9[%28, %c0_33] : memref<8x256xf32, #tpu.memory_space<vmem>>, vector<1x256xf32>
      %cst_34 = arith.constant dense<0.000000e+00> : vector<1x256xf32>
      %30 = tpu.matmul %arg14, %14, %cst_34 {dimension_numbers = #tpu.dot_dimension_numbers<[1], [0], [0], [1], [0, 0, 1, 1], [], []>} : vector<1x64xf32>, vector<64x256xf32>, vector<1x256xf32> -> vector<1x256xf32>
      %31 = arith.addf %29, %30 : vector<1x256xf32>
      %32 = vector.extract_strided_slice %31 {offsets = [0, 0], sizes = [1, 64], strides = [1, 1]} : vector<1x256xf32> to vector<1x64xf32>
      %33 = arith.negf %32 : vector<1x64xf32>
      %34 = math.exp %33 : vector<1x64xf32>
      %cst_35 = arith.constant 1.000000e+00 : f32
      %35 = vector.broadcast %cst_35 : f32 to vector<1x64xf32>
      %36 = arith.addf %35, %34 : vector<1x64xf32>
      %37 = arith.divf %35, %36 : vector<1x64xf32>
      %38 = vector.extract_strided_slice %31 {offsets = [0, 64], sizes = [1, 64], strides = [1, 1]} : vector<1x256xf32> to vector<1x64xf32>
      %39 = arith.negf %38 : vector<1x64xf32>
      %40 = math.exp %39 : vector<1x64xf32>
      %cst_36 = arith.constant 1.000000e+00 : f32
      %41 = vector.broadcast %cst_36 : f32 to vector<1x64xf32>
      %42 = arith.addf %41, %40 : vector<1x64xf32>
      %43 = arith.divf %41, %42 : vector<1x64xf32>
      %44 = vector.extract_strided_slice %31 {offsets = [0, 128], sizes = [1, 64], strides = [1, 1]} : vector<1x256xf32> to vector<1x64xf32>
      %45 = math.tanh %44 : vector<1x64xf32>
      %46 = vector.extract_strided_slice %31 {offsets = [0, 192], sizes = [1, 64], strides = [1, 1]} : vector<1x256xf32> to vector<1x64xf32>
      %47 = arith.negf %46 : vector<1x64xf32>
      %48 = math.exp %47 : vector<1x64xf32>
      %cst_37 = arith.constant 1.000000e+00 : f32
      %49 = vector.broadcast %cst_37 : f32 to vector<1x64xf32>
      %50 = arith.addf %49, %48 : vector<1x64xf32>
      %51 = arith.divf %49, %50 : vector<1x64xf32>
      %52 = arith.mulf %43, %arg15 : vector<1x64xf32>
      %53 = arith.mulf %37, %45 : vector<1x64xf32>
      %54 = arith.addf %52, %53 : vector<1x64xf32>
      %55 = math.tanh %54 : vector<1x64xf32>
      %56 = arith.mulf %51, %55 : vector<1x64xf32>
      %57 = arith.index_cast %arg13 : i32 to index
      %c0_38 = arith.constant 0 : index
      %58 = vector.load %arg11[%57, %c0_38] : memref<8x64xf32, #tpu.memory_space<vmem>>, vector<1x64xf32>
      tpu.vector_store %arg11[%57, %c0_38], %56 {strides = array<i32>} : memref<8x64xf32, #tpu.memory_space<vmem>>, vector<1x64xf32>,
      scf.yield %56, %54 : vector<1x64xf32>, vector<1x64xf32>
    }
    %c8_i32_21 = arith.constant 8 : i32
    %c0_i32_22 = arith.constant 0 : i32
    %c8_i32_23 = arith.constant 8 : i32
    %20 = arith.addi %c0_i32_22, %c8_i32_23 : i32
    %c1_i32_24 = arith.constant 1 : i32
    %21:2 = scf.for %arg13 = %c0_i32_22 to %20 step %c1_i32_24 iter_args(%arg14 = %16, %arg15 = %17) -> (vector<1x64xf32>, vector<1x64xf32>)  : i32 {
      %c7_i32 = arith.constant 7 : i32
      %28 = arith.subi %c7_i32, %arg13 : i32
      %29 = arith.index_cast %28 : i32 to index
      %c0_33 = arith.constant 0 : index
      %30 = vector.load %arg10[%29, %c0_33] : memref<8x256xf32, #tpu.memory_space<vmem>>, vector<1x256xf32>
      %cst_34 = arith.constant dense<0.000000e+00> : vector<1x256xf32>
      %31 = tpu.matmul %arg14, %15, %cst_34 {dimension_numbers = #tpu.dot_dimension_numbers<[1], [0], [0], [1], [0, 0, 1, 1], [], []>} : vector<1x64xf32>, vector<64x256xf32>, vector<1x256xf32> -> vector<1x256xf32>
      %32 = arith.addf %30, %31 : vector<1x256xf32>
      %33 = vector.extract_strided_slice %32 {offsets = [0, 0], sizes = [1, 64], strides = [1, 1]} : vector<1x256xf32> to vector<1x64xf32>
      %34 = arith.negf %33 : vector<1x64xf32>
      %35 = math.exp %34 : vector<1x64xf32>
      %cst_35 = arith.constant 1.000000e+00 : f32
      %36 = vector.broadcast %cst_35 : f32 to vector<1x64xf32>
      %37 = arith.addf %36, %35 : vector<1x64xf32>
      %38 = arith.divf %36, %37 : vector<1x64xf32>
      %39 = vector.extract_strided_slice %32 {offsets = [0, 64], sizes = [1, 64], strides = [1, 1]} : vector<1x256xf32> to vector<1x64xf32>
      %40 = arith.negf %39 : vector<1x64xf32>
      %41 = math.exp %40 : vector<1x64xf32>
      %cst_36 = arith.constant 1.000000e+00 : f32
      %42 = vector.broadcast %cst_36 : f32 to vector<1x64xf32>
      %43 = arith.addf %42, %41 : vector<1x64xf32>
      %44 = arith.divf %42, %43 : vector<1x64xf32>
      %45 = vector.extract_strided_slice %32 {offsets = [0, 128], sizes = [1, 64], strides = [1, 1]} : vector<1x256xf32> to vector<1x64xf32>
      %46 = math.tanh %45 : vector<1x64xf32>
      %47 = vector.extract_strided_slice %32 {offsets = [0, 192], sizes = [1, 64], strides = [1, 1]} : vector<1x256xf32> to vector<1x64xf32>
      %48 = arith.negf %47 : vector<1x64xf32>
      %49 = math.exp %48 : vector<1x64xf32>
      %cst_37 = arith.constant 1.000000e+00 : f32
      %50 = vector.broadcast %cst_37 : f32 to vector<1x64xf32>
      %51 = arith.addf %50, %49 : vector<1x64xf32>
      %52 = arith.divf %50, %51 : vector<1x64xf32>
      %53 = arith.mulf %44, %arg15 : vector<1x64xf32>
      %54 = arith.mulf %38, %46 : vector<1x64xf32>
      %55 = arith.addf %53, %54 : vector<1x64xf32>
      %56 = math.tanh %55 : vector<1x64xf32>
      %57 = arith.mulf %52, %56 : vector<1x64xf32>
      %58 = arith.index_cast %28 : i32 to index
      %c0_38 = arith.constant 0 : index
      %59 = vector.load %arg12[%58, %c0_38] : memref<8x64xf32, #tpu.memory_space<vmem>>, vector<1x64xf32>
      tpu.vector_store %arg12[%58, %c0_38], %57 {strides = array<i32>} : memref<8x64xf32, #tpu.memory_space<vmem>>, vector<1x64xf32>,
      scf.yield %57, %55 : vector<1x64xf32>, vector<1x64xf32>
    }
    %c8_i32_25 = arith.constant 8 : i32
    %c0_26 = arith.constant 0 : index
    %c0_27 = arith.constant 0 : index
    %22 = vector.load %arg11[%c0_26, %c0_27] : memref<8x64xf32, #tpu.memory_space<vmem>>, vector<8x64xf32>
    %c0_28 = arith.constant 0 : index
    %c0_29 = arith.constant 0 : index
    %23 = vector.load %arg12[%c0_28, %c0_29] : memref<8x64xf32, #tpu.memory_space<vmem>>, vector<8x64xf32>
    %24 = tpu.concatenate %22, %23 in 1 : vector<8x64xf32>, vector<8x64xf32> -> vector<8x128xf32>
    %c0_30 = arith.constant 0 : index
    %c0_31 = arith.constant 0 : index
    %c0_32 = arith.constant 0 : index
    %25 = vector.load %arg8[%c0_30, %c0_31, %c0_32] : memref<1x8x128xf32, #tpu.memory_space<vmem>>, vector<1x8x128xf32>
    %26 = vector.shape_cast %25 : vector<1x8x128xf32> to vector<8x128xf32>
    %27 = vector.shape_cast %24 : vector<8x128xf32> to vector<1x8x128xf32>
    tpu.vector_store %arg8[%c0_30, %c0_31, %c0_32], %27 {strides = array<i32>} : memref<1x8x128xf32, #tpu.memory_space<vmem>>, vector<1x8x128xf32>,
    return
  }
  func.func @transform_0(%arg0: i32) -> (i32, i32, i32) {
    %c0_i32 = arith.constant 0 : i32
    %c0_i32_0 = arith.constant 0 : i32
    %c0_i32_1 = arith.constant 0 : i32
    return %arg0, %c0_i32, %c0_i32_0 : i32, i32, i32
  }
  func.func @transform_1(%arg0: i32) -> (i32, i32) {
    %c0_i32 = arith.constant 0 : i32
    %c0_i32_0 = arith.constant 0 : i32
    %c0_i32_1 = arith.constant 0 : i32
    return %c0_i32, %c0_i32_0 : i32, i32
  }
  func.func @transform_2(%arg0: i32) -> (i32, i32) {
    %c0_i32 = arith.constant 0 : i32
    %c0_i32_0 = arith.constant 0 : i32
    %c0_i32_1 = arith.constant 0 : i32
    return %c0_i32, %c0_i32_0 : i32, i32
  }
  func.func @transform_3(%arg0: i32) -> (i32, i32) {
    %c0_i32 = arith.constant 0 : i32
    %c0_i32_0 = arith.constant 0 : i32
    %c0_i32_1 = arith.constant 0 : i32
    return %c0_i32, %c0_i32_0 : i32, i32
  }
  func.func @transform_4(%arg0: i32) -> (i32, i32) {
    %c0_i32 = arith.constant 0 : i32
    %c0_i32_0 = arith.constant 0 : i32
    %c0_i32_1 = arith.constant 0 : i32
    return %c0_i32, %c0_i32_0 : i32, i32
  }
  func.func @transform_5(%arg0: i32) -> (i32, i32) {
    %c0_i32 = arith.constant 0 : i32
    %c0_i32_0 = arith.constant 0 : i32
    %c0_i32_1 = arith.constant 0 : i32
    return %c0_i32, %c0_i32_0 : i32, i32
  }
  func.func @transform_6(%arg0: i32) -> (i32, i32) {
    %c0_i32 = arith.constant 0 : i32
    %c0_i32_0 = arith.constant 0 : i32
    %c0_i32_1 = arith.constant 0 : i32
    return %c0_i32, %c0_i32_0 : i32, i32
  }
  func.func @transform_7(%arg0: i32) -> (i32, i32, i32) {
    %c0_i32 = arith.constant 0 : i32
    %c0_i32_0 = arith.constant 0 : i32
    %c0_i32_1 = arith.constant 0 : i32
    return %arg0, %c0_i32, %c0_i32_0 : i32, i32, i32
  }
}

module attributes {stable_mosaic.version = 11 : i64} {
  func.func @_conv_stack_kernel(%arg0: i32, %arg1: memref<1x10x128xf32, #tpu.memory_space<vmem>>, %arg2: memref<3x128x64xf32, #tpu.memory_space<vmem>>, %arg3: memref<1x64xf32, #tpu.memory_space<vmem>>, %arg4: memref<3x64x128xf32, #tpu.memory_space<vmem>>, %arg5: memref<1x128xf32, #tpu.memory_space<vmem>>, %arg6: memref<1x8x128xf32, #tpu.memory_space<vmem>>) attributes {dimension_semantics = [#tpu.dimension_semantics<parallel>], iteration_bounds = array<i64: 2>, scalar_prefetch = 0 : i64, scratch_operands = 0 : i64, tpu.core_type = #tpu.core_type<tc>, window_params = [{transform_indices = @transform_0, window_bounds = array<i64: 1, 10, 128>}, {pipeline_mode = #tpu.pipeline_mode<synchronous>, transform_indices = @transform_1, window_bounds = array<i64: 3, 128, 64>}, {pipeline_mode = #tpu.pipeline_mode<synchronous>, transform_indices = @transform_2, window_bounds = array<i64: 1, 64>}, {pipeline_mode = #tpu.pipeline_mode<synchronous>, transform_indices = @transform_3, window_bounds = array<i64: 3, 64, 128>}, {pipeline_mode = #tpu.pipeline_mode<synchronous>, transform_indices = @transform_4, window_bounds = array<i64: 1, 128>}, {transform_indices = @transform_5, window_bounds = array<i64: 1, 8, 128>}]} {
    %c0 = arith.constant 0 : index
    %c0_0 = arith.constant 0 : index
    %c0_1 = arith.constant 0 : index
    %0 = vector.load %arg1[%c0, %c0_0, %c0_1] : memref<1x10x128xf32, #tpu.memory_space<vmem>>, vector<1x10x128xf32>
    %1 = vector.shape_cast %0 : vector<1x10x128xf32> to vector<10x128xf32>
    %2 = vector.extract_strided_slice %1 {offsets = [0, 0], sizes = [8, 128], strides = [1, 1]} : vector<10x128xf32> to vector<8x128xf32>
    %c0_2 = arith.constant 0 : index
    %c0_3 = arith.constant 0 : index
    %c0_4 = arith.constant 0 : index
    %3 = vector.load %arg2[%c0_2, %c0_3, %c0_4] : memref<3x128x64xf32, #tpu.memory_space<vmem>>, vector<1x128x64xf32>
    %4 = vector.shape_cast %3 : vector<1x128x64xf32> to vector<128x64xf32>
    %cst = arith.constant dense<0.000000e+00> : vector<8x64xf32>
    %5 = tpu.matmul %2, %4, %cst {dimension_numbers = #tpu.dot_dimension_numbers<[1], [0], [0], [1], [0, 0, 1, 1], [], []>} : vector<8x128xf32>, vector<128x64xf32>, vector<8x64xf32> -> vector<8x64xf32>
    %6 = vector.extract_strided_slice %1 {offsets = [1, 0], sizes = [8, 128], strides = [1, 1]} : vector<10x128xf32> to vector<8x128xf32>
    %c1 = arith.constant 1 : index
    %c0_5 = arith.constant 0 : index
    %c0_6 = arith.constant 0 : index
    %7 = vector.load %arg2[%c1, %c0_5, %c0_6] : memref<3x128x64xf32, #tpu.memory_space<vmem>>, vector<1x128x64xf32>
    %8 = vector.shape_cast %7 : vector<1x128x64xf32> to vector<128x64xf32>
    %cst_7 = arith.constant dense<0.000000e+00> : vector<8x64xf32>
    %9 = tpu.matmul %6, %8, %cst_7 {dimension_numbers = #tpu.dot_dimension_numbers<[1], [0], [0], [1], [0, 0, 1, 1], [], []>} : vector<8x128xf32>, vector<128x64xf32>, vector<8x64xf32> -> vector<8x64xf32>
    %10 = arith.addf %5, %9 : vector<8x64xf32>
    %11 = vector.extract_strided_slice %1 {offsets = [2, 0], sizes = [8, 128], strides = [1, 1]} : vector<10x128xf32> to vector<8x128xf32>
    %c2 = arith.constant 2 : index
    %c0_8 = arith.constant 0 : index
    %c0_9 = arith.constant 0 : index
    %12 = vector.load %arg2[%c2, %c0_8, %c0_9] : memref<3x128x64xf32, #tpu.memory_space<vmem>>, vector<1x128x64xf32>
    %13 = vector.shape_cast %12 : vector<1x128x64xf32> to vector<128x64xf32>
    %cst_10 = arith.constant dense<0.000000e+00> : vector<8x64xf32>
    %14 = tpu.matmul %11, %13, %cst_10 {dimension_numbers = #tpu.dot_dimension_numbers<[1], [0], [0], [1], [0, 0, 1, 1], [], []>} : vector<8x128xf32>, vector<128x64xf32>, vector<8x64xf32> -> vector<8x64xf32>
    %15 = arith.addf %10, %14 : vector<8x64xf32>
    %c0_11 = arith.constant 0 : index
    %c0_12 = arith.constant 0 : index
    %16 = vector.load %arg3[%c0_11, %c0_12] : memref<1x64xf32, #tpu.memory_space<vmem>>, vector<1x64xf32>
    %17 = vector.broadcast %16 : vector<1x64xf32> to vector<8x64xf32>
    %18 = arith.addf %15, %17 : vector<8x64xf32>
    %cst_13 = arith.constant 0.000000e+00 : f32
    %19 = vector.broadcast %cst_13 : f32 to vector<8x64xf32>
    %20 = arith.maximumf %18, %19 : vector<8x64xf32>
    %cst_14 = arith.constant 0.000000e+00 : f32
    %21 = vector.broadcast %cst_14 : f32 to vector<1x64xf32>
    %22 = tpu.concatenate %21, %20, %21 in 0 : vector<1x64xf32>, vector<8x64xf32>, vector<1x64xf32> -> vector<10x64xf32>
    %23 = vector.extract_strided_slice %22 {offsets = [0, 0], sizes = [8, 64], strides = [1, 1]} : vector<10x64xf32> to vector<8x64xf32>
    %c0_15 = arith.constant 0 : index
    %c0_16 = arith.constant 0 : index
    %c0_17 = arith.constant 0 : index
    %24 = vector.load %arg4[%c0_15, %c0_16, %c0_17] : memref<3x64x128xf32, #tpu.memory_space<vmem>>, vector<1x64x128xf32>
    %25 = vector.shape_cast %24 : vector<1x64x128xf32> to vector<64x128xf32>
    %cst_18 = arith.constant dense<0.000000e+00> : vector<8x128xf32>
    %26 = tpu.matmul %23, %25, %cst_18 {dimension_numbers = #tpu.dot_dimension_numbers<[1], [0], [0], [1], [0, 0, 1, 1], [], []>} : vector<8x64xf32>, vector<64x128xf32>, vector<8x128xf32> -> vector<8x128xf32>
    %27 = vector.extract_strided_slice %22 {offsets = [1, 0], sizes = [8, 64], strides = [1, 1]} : vector<10x64xf32> to vector<8x64xf32>
    %c1_19 = arith.constant 1 : index
    %c0_20 = arith.constant 0 : index
    %c0_21 = arith.constant 0 : index
    %28 = vector.load %arg4[%c1_19, %c0_20, %c0_21] : memref<3x64x128xf32, #tpu.memory_space<vmem>>, vector<1x64x128xf32>
    %29 = vector.shape_cast %28 : vector<1x64x128xf32> to vector<64x128xf32>
    %cst_22 = arith.constant dense<0.000000e+00> : vector<8x128xf32>
    %30 = tpu.matmul %27, %29, %cst_22 {dimension_numbers = #tpu.dot_dimension_numbers<[1], [0], [0], [1], [0, 0, 1, 1], [], []>} : vector<8x64xf32>, vector<64x128xf32>, vector<8x128xf32> -> vector<8x128xf32>
    %31 = arith.addf %26, %30 : vector<8x128xf32>
    %32 = vector.extract_strided_slice %22 {offsets = [2, 0], sizes = [8, 64], strides = [1, 1]} : vector<10x64xf32> to vector<8x64xf32>
    %c2_23 = arith.constant 2 : index
    %c0_24 = arith.constant 0 : index
    %c0_25 = arith.constant 0 : index
    %33 = vector.load %arg4[%c2_23, %c0_24, %c0_25] : memref<3x64x128xf32, #tpu.memory_space<vmem>>, vector<1x64x128xf32>
    %34 = vector.shape_cast %33 : vector<1x64x128xf32> to vector<64x128xf32>
    %cst_26 = arith.constant dense<0.000000e+00> : vector<8x128xf32>
    %35 = tpu.matmul %32, %34, %cst_26 {dimension_numbers = #tpu.dot_dimension_numbers<[1], [0], [0], [1], [0, 0, 1, 1], [], []>} : vector<8x64xf32>, vector<64x128xf32>, vector<8x128xf32> -> vector<8x128xf32>
    %36 = arith.addf %31, %35 : vector<8x128xf32>
    %c0_27 = arith.constant 0 : index
    %c0_28 = arith.constant 0 : index
    %37 = vector.load %arg5[%c0_27, %c0_28] : memref<1x128xf32, #tpu.memory_space<vmem>>, vector<1x128xf32>
    %38 = vector.broadcast %37 : vector<1x128xf32> to vector<8x128xf32>
    %39 = arith.addf %36, %38 : vector<8x128xf32>
    %cst_29 = arith.constant 0.000000e+00 : f32
    %40 = vector.broadcast %cst_29 : f32 to vector<8x128xf32>
    %41 = arith.maximumf %39, %40 : vector<8x128xf32>
    %c0_30 = arith.constant 0 : index
    %c0_31 = arith.constant 0 : index
    %c0_32 = arith.constant 0 : index
    %42 = vector.load %arg6[%c0_30, %c0_31, %c0_32] : memref<1x8x128xf32, #tpu.memory_space<vmem>>, vector<1x8x128xf32>
    %43 = vector.shape_cast %42 : vector<1x8x128xf32> to vector<8x128xf32>
    %44 = vector.shape_cast %41 : vector<8x128xf32> to vector<1x8x128xf32>
    tpu.vector_store %arg6[%c0_30, %c0_31, %c0_32], %44 {strides = array<i32>} : memref<1x8x128xf32, #tpu.memory_space<vmem>>, vector<1x8x128xf32>,
    return
  }
  func.func @transform_0(%arg0: i32) -> (i32, i32, i32) {
    %c0_i32 = arith.constant 0 : i32
    %c0_i32_0 = arith.constant 0 : i32
    %c0_i32_1 = arith.constant 0 : i32
    return %arg0, %c0_i32, %c0_i32_0 : i32, i32, i32
  }
  func.func @transform_1(%arg0: i32) -> (i32, i32, i32) {
    %c0_i32 = arith.constant 0 : i32
    %c0_i32_0 = arith.constant 0 : i32
    %c0_i32_1 = arith.constant 0 : i32
    %c0_i32_2 = arith.constant 0 : i32
    return %c0_i32, %c0_i32_0, %c0_i32_1 : i32, i32, i32
  }
  func.func @transform_2(%arg0: i32) -> (i32, i32) {
    %c0_i32 = arith.constant 0 : i32
    %c0_i32_0 = arith.constant 0 : i32
    %c0_i32_1 = arith.constant 0 : i32
    return %c0_i32, %c0_i32_0 : i32, i32
  }
  func.func @transform_3(%arg0: i32) -> (i32, i32, i32) {
    %c0_i32 = arith.constant 0 : i32
    %c0_i32_0 = arith.constant 0 : i32
    %c0_i32_1 = arith.constant 0 : i32
    %c0_i32_2 = arith.constant 0 : i32
    return %c0_i32, %c0_i32_0, %c0_i32_1 : i32, i32, i32
  }
  func.func @transform_4(%arg0: i32) -> (i32, i32) {
    %c0_i32 = arith.constant 0 : i32
    %c0_i32_0 = arith.constant 0 : i32
    %c0_i32_1 = arith.constant 0 : i32
    return %c0_i32, %c0_i32_0 : i32, i32
  }
  func.func @transform_5(%arg0: i32) -> (i32, i32, i32) {
    %c0_i32 = arith.constant 0 : i32
    %c0_i32_0 = arith.constant 0 : i32
    %c0_i32_1 = arith.constant 0 : i32
    return %arg0, %c0_i32, %c0_i32_0 : i32, i32, i32
  }
}

module attributes {stable_mosaic.version = 11 : i64} {
  func.func @_bilstm_layer_kernel(%arg0: i32, %arg1: memref<1x8x128xf32, #tpu.memory_space<vmem>>, %arg2: memref<128x256xf32, #tpu.memory_space<vmem>>, %arg3: memref<64x256xf32, #tpu.memory_space<vmem>>, %arg4: memref<1x256xf32, #tpu.memory_space<vmem>>, %arg5: memref<128x256xf32, #tpu.memory_space<vmem>>, %arg6: memref<64x256xf32, #tpu.memory_space<vmem>>, %arg7: memref<1x256xf32, #tpu.memory_space<vmem>>, %arg8: memref<1x8x128xf32, #tpu.memory_space<vmem>>, %arg9: memref<8x256xf32, #tpu.memory_space<vmem>>, %arg10: memref<8x256xf32, #tpu.memory_space<vmem>>, %arg11: memref<8x64xf32, #tpu.memory_space<vmem>>, %arg12: memref<8x64xf32, #tpu.memory_space<vmem>>) attributes {dimension_semantics = [#tpu.dimension_semantics<parallel>], iteration_bounds = array<i64: 2>, scalar_prefetch = 0 : i64, scratch_operands = 4 : i64, tpu.core_type = #tpu.core_type<tc>, window_params = [{transform_indices = @transform_0, window_bounds = array<i64: 1, 8, 128>}, {pipeline_mode = #tpu.pipeline_mode<synchronous>, transform_indices = @transform_1, window_bounds = array<i64: 128, 256>}, {pipeline_mode = #tpu.pipeline_mode<synchronous>, transform_indices = @transform_2, window_bounds = array<i64: 64, 256>}, {pipeline_mode = #tpu.pipeline_mode<synchronous>, transform_indices = @transform_3, window_bounds = array<i64: 1, 256>}, {pipeline_mode = #tpu.pipeline_mode<synchronous>, transform_indices = @transform_4, window_bounds = array<i64: 128, 256>}, {pipeline_mode = #tpu.pipeline_mode<synchronous>, transform_indices = @transform_5, window_bounds = array<i64: 64, 256>}, {pipeline_mode = #tpu.pipeline_mode<synchronous>, transform_indices = @transform_6, window_bounds = array<i64: 1, 256>}, {transform_indices = @transform_7, window_bounds = array<i64: 1, 8, 128>}]} {
    %c0 = arith.constant 0 : index
    %c0_0 = arith.constant 0 : index
    %c0_1 = arith.constant 0 : index
    %0 = vector.load %arg1[%c0, %c0_0, %c0_1] : memref<1x8x128xf32, #tpu.memory_space<vmem>>, vector<1x8x128xf32>
    %1 = vector.shape_cast %0 : vector<1x8x128xf32> to vector<8x128xf32>
    %c0_2 = arith.constant 0 : index
    %c0_3 = arith.constant 0 : index
    %2 = vector.load %arg2[%c0_2, %c0_3] : memref<128x256xf32, #tpu.memory_space<vmem>>, vector<128x256xf32>
    %cst = arith.constant dense<0.000000e+00> : vector<8x256xf32>
    %3 = tpu.matmul %1, %2, %cst {dimension_numbers = #tpu.dot_dimension_numbers<[1], [0], [0], [1], [0, 0, 1, 1], [], []>} : vector<8x128xf32>, vector<128x256xf32>, vector<8x256xf32> -> vector<8x256xf32>
    %c0_4 = arith.constant 0 : index
    %c0_5 = arith.constant 0 : index
    %4 = vector.load %arg4[%c0_4, %c0_5] : memref<1x256xf32, #tpu.memory_space<vmem>>, vector<1x256xf32>
    %5 = vector.broadcast %4 : vector<1x256xf32> to vector<8x256xf32>
    %6 = arith.addf %3, %5 : vector<8x256xf32>
    %c0_6 = arith.constant 0 : index
    %c0_7 = arith.constant 0 : index
    %7 = vector.load %arg9[%c0_6, %c0_7] : memref<8x256xf32, #tpu.memory_space<vmem>>, vector<8x256xf32>
    tpu.vector_store %arg9[%c0_6, %c0_7], %6 {strides = array<i32>} : memref<8x256xf32, #tpu.memory_space<vmem>>, vector<8x256xf32>,
    %c0_8 = arith.constant 0 : index
    %c0_9 = arith.constant 0 : index
    %8 = vector.load %arg5[%c0_8, %c0_9] : memref<128x256xf32, #tpu.memory_space<vmem>>, vector<128x256xf32>
    %cst_10 = arith.constant dense<0.000000e+00> : vector<8x256xf32>
    %9 = tpu.matmul %1, %8, %cst_10 {dimension_numbers = #tpu.dot_dimension_numbers<[1], [0], [0], [1], [0, 0, 1, 1], [], []>} : vector<8x128xf32>, vector<128x256xf32>, vector<8x256xf32> -> vector<8x256xf32>
    %c0_11 = arith.constant 0 : index
    %c0_12 = arith.constant 0 : index
    %10 = vector.load %arg7[%c0_11, %c0_12] : memref<1x256xf32, #tpu.memory_space<vmem>>, vector<1x256xf32>
    %11 = vector.broadcast %10 : vector<1x256xf32> to vector<8x256xf32>
    %12 = arith.addf %9, %11 : vector<8x256xf32>
    %c0_13 = arith.constant 0 : index
    %c0_14 = arith.constant 0 : index
    %13 = vector.load %arg10[%c0_13, %c0_14] : memref<8x256xf32, #tpu.memory_space<vmem>>, vector<8x256xf32>
    tpu.vector_store %arg10[%c0_13, %c0_14], %12 {strides = array<i32>} : memref<8x256xf32, #tpu.memory_space<vmem>>, vector<8x256xf32>,
    %c0_15 = arith.constant 0 : index
    %c0_16 = arith.constant 0 : index
    %14 = vector.load %arg3[%c0_15, %c0_16] : memref<64x256xf32, #tpu.memory_space<vmem>>, vector<64x256xf32>
    %c0_17 = arith.constant 0 : index
    %c0_18 = arith.constant 0 : index
    %15 = vector.load %arg6[%c0_17, %c0_18] : memref<64x256xf32, #tpu.memory_space<vmem>>, vector<64x256xf32>
    %cst_19 = arith.constant 0.000000e+00 : f32
    %16 = vector.broadcast %cst_19 : f32 to vector<1x64xf32>
    %cst_20 = arith.constant 0.000000e+00 : f32
    %17 = vector.broadcast %cst_20 : f32 to vector<1x64xf32>
    %c0_i32 = arith.constant 0 : i32
    %c8_i32 = arith.constant 8 : i32
    %18 = arith.addi %c0_i32, %c8_i32 : i32
    %c1_i32 = arith.constant 1 : i32
    %19:2 = scf.for %arg13 = %c0_i32 to %18 step %c1_i32 iter_args(%arg14 = %16, %arg15 = %17) -> (vector<1x64xf32>, vector<1x64xf32>)  : i32 {
      %28 = arith.index_cast %arg13 : i32 to index
      %c0_33 = arith.constant 0 : index
      %29 = vector.load %arg9[%28, %c0_33] : memref<8x256xf32, #tpu.memory_space<vmem>>, vector<1x256xf32>
      %cst_34 = arith.constant dense<0.000000e+00> : vector<1x256xf32>
      %30 = tpu.matmul %arg14, %14, %cst_34 {dimension_numbers = #tpu.dot_dimension_numbers<[1], [0], [0], [1], [0, 0, 1, 1], [], []>} : vector<1x64xf32>, vector<64x256xf32>, vector<1x256xf32> -> vector<1x256xf32>
      %31 = arith.addf %29, %30 : vector<1x256xf32>
      %32 = vector.extract_strided_slice %31 {offsets = [0, 0], sizes = [1, 64], strides = [1, 1]} : vector<1x256xf32> to vector<1x64xf32>
      %33 = arith.negf %32 : vector<1x64xf32>
      %34 = math.exp %33 : vector<1x64xf32>
      %cst_35 = arith.constant 1.000000e+00 : f32
      %35 = vector.broadcast %cst_35 : f32 to vector<1x64xf32>
      %36 = arith.addf %35, %34 : vector<1x64xf32>
      %37 = arith.divf %35, %36 : vector<1x64xf32>
      %38 = vector.extract_strided_slice %31 {offsets = [0, 64], sizes = [1, 64], strides = [1, 1]} : vector<1x256xf32> to vector<1x64xf32>
      %39 = arith.negf %38 : vector<1x64xf32>
      %40 = math.exp %39 : vector<1x64xf32>
      %cst_36 = arith.constant 1.000000e+00 : f32
      %41 = vector.broadcast %cst_36 : f32 to vector<1x64xf32>
      %42 = arith.addf %41, %40 : vector<1x64xf32>
      %43 = arith.divf %41, %42 : vector<1x64xf32>
      %44 = vector.extract_strided_slice %31 {offsets = [0, 128], sizes = [1, 64], strides = [1, 1]} : vector<1x256xf32> to vector<1x64xf32>
      %45 = math.tanh %44 : vector<1x64xf32>
      %46 = vector.extract_strided_slice %31 {offsets = [0, 192], sizes = [1, 64], strides = [1, 1]} : vector<1x256xf32> to vector<1x64xf32>
      %47 = arith.negf %46 : vector<1x64xf32>
      %48 = math.exp %47 : vector<1x64xf32>
      %cst_37 = arith.constant 1.000000e+00 : f32
      %49 = vector.broadcast %cst_37 : f32 to vector<1x64xf32>
      %50 = arith.addf %49, %48 : vector<1x64xf32>
      %51 = arith.divf %49, %50 : vector<1x64xf32>
      %52 = arith.mulf %43, %arg15 : vector<1x64xf32>
      %53 = arith.mulf %37, %45 : vector<1x64xf32>
      %54 = arith.addf %52, %53 : vector<1x64xf32>
      %55 = math.tanh %54 : vector<1x64xf32>
      %56 = arith.mulf %51, %55 : vector<1x64xf32>
      %57 = arith.index_cast %arg13 : i32 to index
      %c0_38 = arith.constant 0 : index
      %58 = vector.load %arg11[%57, %c0_38] : memref<8x64xf32, #tpu.memory_space<vmem>>, vector<1x64xf32>
      tpu.vector_store %arg11[%57, %c0_38], %56 {strides = array<i32>} : memref<8x64xf32, #tpu.memory_space<vmem>>, vector<1x64xf32>,
      scf.yield %56, %54 : vector<1x64xf32>, vector<1x64xf32>
    }
    %c8_i32_21 = arith.constant 8 : i32
    %c0_i32_22 = arith.constant 0 : i32
    %c8_i32_23 = arith.constant 8 : i32
    %20 = arith.addi %c0_i32_22, %c8_i32_23 : i32
    %c1_i32_24 = arith.constant 1 : i32
    %21:2 = scf.for %arg13 = %c0_i32_22 to %20 step %c1_i32_24 iter_args(%arg14 = %16, %arg15 = %17) -> (vector<1x64xf32>, vector<1x64xf32>)  : i32 {
      %c7_i32 = arith.constant 7 : i32
      %28 = arith.subi %c7_i32, %arg13 : i32
      %29 = arith.index_cast %28 : i32 to index
      %c0_33 = arith.constant 0 : index
      %30 = vector.load %arg10[%29, %c0_33] : memref<8x256xf32, #tpu.memory_space<vmem>>, vector<1x256xf32>
      %cst_34 = arith.constant dense<0.000000e+00> : vector<1x256xf32>
      %31 = tpu.matmul %arg14, %15, %cst_34 {dimension_numbers = #tpu.dot_dimension_numbers<[1], [0], [0], [1], [0, 0, 1, 1], [], []>} : vector<1x64xf32>, vector<64x256xf32>, vector<1x256xf32> -> vector<1x256xf32>
      %32 = arith.addf %30, %31 : vector<1x256xf32>
      %33 = vector.extract_strided_slice %32 {offsets = [0, 0], sizes = [1, 64], strides = [1, 1]} : vector<1x256xf32> to vector<1x64xf32>
      %34 = arith.negf %33 : vector<1x64xf32>
      %35 = math.exp %34 : vector<1x64xf32>
      %cst_35 = arith.constant 1.000000e+00 : f32
      %36 = vector.broadcast %cst_35 : f32 to vector<1x64xf32>
      %37 = arith.addf %36, %35 : vector<1x64xf32>
      %38 = arith.divf %36, %37 : vector<1x64xf32>
      %39 = vector.extract_strided_slice %32 {offsets = [0, 64], sizes = [1, 64], strides = [1, 1]} : vector<1x256xf32> to vector<1x64xf32>
      %40 = arith.negf %39 : vector<1x64xf32>
      %41 = math.exp %40 : vector<1x64xf32>
      %cst_36 = arith.constant 1.000000e+00 : f32
      %42 = vector.broadcast %cst_36 : f32 to vector<1x64xf32>
      %43 = arith.addf %42, %41 : vector<1x64xf32>
      %44 = arith.divf %42, %43 : vector<1x64xf32>
      %45 = vector.extract_strided_slice %32 {offsets = [0, 128], sizes = [1, 64], strides = [1, 1]} : vector<1x256xf32> to vector<1x64xf32>
      %46 = math.tanh %45 : vector<1x64xf32>
      %47 = vector.extract_strided_slice %32 {offsets = [0, 192], sizes = [1, 64], strides = [1, 1]} : vector<1x256xf32> to vector<1x64xf32>
      %48 = arith.negf %47 : vector<1x64xf32>
      %49 = math.exp %48 : vector<1x64xf32>
      %cst_37 = arith.constant 1.000000e+00 : f32
      %50 = vector.broadcast %cst_37 : f32 to vector<1x64xf32>
      %51 = arith.addf %50, %49 : vector<1x64xf32>
      %52 = arith.divf %50, %51 : vector<1x64xf32>
      %53 = arith.mulf %44, %arg15 : vector<1x64xf32>
      %54 = arith.mulf %38, %46 : vector<1x64xf32>
      %55 = arith.addf %53, %54 : vector<1x64xf32>
      %56 = math.tanh %55 : vector<1x64xf32>
      %57 = arith.mulf %52, %56 : vector<1x64xf32>
      %58 = arith.index_cast %28 : i32 to index
      %c0_38 = arith.constant 0 : index
      %59 = vector.load %arg12[%58, %c0_38] : memref<8x64xf32, #tpu.memory_space<vmem>>, vector<1x64xf32>
      tpu.vector_store %arg12[%58, %c0_38], %57 {strides = array<i32>} : memref<8x64xf32, #tpu.memory_space<vmem>>, vector<1x64xf32>,
      scf.yield %57, %55 : vector<1x64xf32>, vector<1x64xf32>
    }
    %c8_i32_25 = arith.constant 8 : i32
    %c0_26 = arith.constant 0 : index
    %c0_27 = arith.constant 0 : index
    %22 = vector.load %arg11[%c0_26, %c0_27] : memref<8x64xf32, #tpu.memory_space<vmem>>, vector<8x64xf32>
    %c0_28 = arith.constant 0 : index
    %c0_29 = arith.constant 0 : index
    %23 = vector.load %arg12[%c0_28, %c0_29] : memref<8x64xf32, #tpu.memory_space<vmem>>, vector<8x64xf32>
    %24 = tpu.concatenate %22, %23 in 1 : vector<8x64xf32>, vector<8x64xf32> -> vector<8x128xf32>
    %c0_30 = arith.constant 0 : index
    %c0_31 = arith.constant 0 : index
    %c0_32 = arith.constant 0 : index
    %25 = vector.load %arg8[%c0_30, %c0_31, %c0_32] : memref<1x8x128xf32, #tpu.memory_space<vmem>>, vector<1x8x128xf32>
    %26 = vector.shape_cast %25 : vector<1x8x128xf32> to vector<8x128xf32>
    %27 = vector.shape_cast %24 : vector<8x128xf32> to vector<1x8x128xf32>
    tpu.vector_store %arg8[%c0_30, %c0_31, %c0_32], %27 {strides = array<i32>} : memref<1x8x128xf32, #tpu.memory_space<vmem>>, vector<1x8x128xf32>,
    return
  }
  func.func @transform_0(%arg0: i32) -> (i32, i32, i32) {
    %c0_i32 = arith.constant 0 : i32
    %c0_i32_0 = arith.constant 0 : i32
    %c0_i32_1 = arith.constant 0 : i32
    return %arg0, %c0_i32, %c0_i32_0 : i32, i32, i32
  }
  func.func @transform_1(%arg0: i32) -> (i32, i32) {
    %c0_i32 = arith.constant 0 : i32
    %c0_i32_0 = arith.constant 0 : i32
    %c0_i32_1 = arith.constant 0 : i32
    return %c0_i32, %c0_i32_0 : i32, i32
  }
  func.func @transform_2(%arg0: i32) -> (i32, i32) {
    %c0_i32 = arith.constant 0 : i32
    %c0_i32_0 = arith.constant 0 : i32
    %c0_i32_1 = arith.constant 0 : i32
    return %c0_i32, %c0_i32_0 : i32, i32
  }
  func.func @transform_3(%arg0: i32) -> (i32, i32) {
    %c0_i32 = arith.constant 0 : i32
    %c0_i32_0 = arith.constant 0 : i32
    %c0_i32_1 = arith.constant 0 : i32
    return %c0_i32, %c0_i32_0 : i32, i32
  }
  func.func @transform_4(%arg0: i32) -> (i32, i32) {
    %c0_i32 = arith.constant 0 : i32
    %c0_i32_0 = arith.constant 0 : i32
    %c0_i32_1 = arith.constant 0 : i32
    return %c0_i32, %c0_i32_0 : i32, i32
  }
  func.func @transform_5(%arg0: i32) -> (i32, i32) {
    %c0_i32 = arith.constant 0 : i32
    %c0_i32_0 = arith.constant 0 : i32
    %c0_i32_1 = arith.constant 0 : i32
    return %c0_i32, %c0_i32_0 : i32, i32
  }
  func.func @transform_6(%arg0: i32) -> (i32, i32) {
    %c0_i32 = arith.constant 0 : i32
    %c0_i32_0 = arith.constant 0 : i32
    %c0_i32_1 = arith.constant 0 : i32
    return %c0_i32, %c0_i32_0 : i32, i32
  }
  func.func @transform_7(%arg0: i32) -> (i32, i32, i32) {
    %c0_i32 = arith.constant 0 : i32
    %c0_i32_0 = arith.constant 0 : i32
    %c0_i32_1 = arith.constant 0 : i32
    return %arg0, %c0_i32, %c0_i32_0 : i32, i32, i32
  }
}

</mosaic_0001>

<bundles_post_ra>
// kernel: audio_expert_forward.4
= control target key start
LH: loop header
LB: loop body
LE: loop exit
PB: predicated region body
PF: predicated region fallthrough
CT: control target
= control target key end

     0   :  { %s1139_s24 = smov 0   ;;  %s1617_s0 = inlined_call_operand.vmem [shape: f32[2,8,128], index: 0, kind: input, shape index: {}]   ;;  %s1618_s1 = inlined_call_operand.vmem [shape: f32[128,256], index: 1, kind: input, shape index: {}]   ;;  %s1619_s2 = inlined_call_operand.vmem [shape: f32[64,256], index: 2, kind: input, shape index: {}]   ;;  %s1620_s3 = inlined_call_operand.vmem [shape: f32[1,256], index: 3, kind: input, shape index: {}]   ;;  %s1621_s4 = inlined_call_operand.vmem [shape: f32[128,256], index: 4, kind: input, shape index: {}]   ;;  %s1622_s5 = inlined_call_operand.vmem [shape: f32[64,256], index: 5, kind: input, shape index: {}]   ;;  %s1623_s6 = inlined_call_operand.vmem [shape: f32[1,256], index: 6, kind: input, shape index: {}]   ;;  %s1624_s7 = inlined_call_operand.vmem [shape: f32[2,8,128], index: 7, kind: output, shape index: {}]  }
   0x1 LB: > { %s928_s25 = sadd.s32 4294967295, %s1066_s24   ;;  %p932_p0 = scmp.ge.s32.totalorder %s1066_s24, 1  ;;  %s1066_s24 = sphi %s1139_s24, %s17_s24  }
   0x2   : > { %p236_p1 = scmp.lt.s32.totalorder %s1066_s24, 3 }
   0x4   : > { %p237_p2 = pnand %p932_p0, %p236_p1 }
   0x5   : > { %p266_p3 = scmp.lt.s32.totalorder (!%p237_p2), %s928_s25, 1  ;;  %s1528_s27 = smov (!%p237_p2), 0  }
   0x6   : > { %240 = sbr.rel (%p237_p2) target bundleno = 1372 (0x55c), region = 48 }
   0xb   : > { %v306_v0 = vld [vmem:[%s1618_s1 + $0xf8] sm:$0xff]  ;;  %v305_v2 = vld [vmem:[%s1618_s1 + $0xf0] sm:$0xff]  ;;  %v304_v4 = vld [vmem:[%s1618_s1 + $0xe8] sm:$0xff]  ;;  %s1626_s25 = smov (!%p266_p3, %s928_s25), 1 }
   0xc   : > { %v423_v1 = vld [vmem:[%s1621_s4 + $0xf8] sm:$0xff]  ;;  %319 = vmatprep.subr.mxu0 %v306_v0  ;;  %v422_v3 = vld [vmem:[%s1621_s4 + $0xf0] sm:$0xff]  ;;  %v421_v5 = vld [vmem:[%s1621_s4 + $0xe8] sm:$0xff]  ;;  %s933_s10 = sshll.u32 %s1626_s25, 3 }
   0xd   : > { %436 = vmatprep.subr.mxu1 %v423_v1  ;;  %320 = vmatpush1.msra.mxu0 %v305_v2  ;;  %v303_v6 = vld [vmem:[%s1618_s1 + $0xe0] sm:$0xff]  ;;  %v302_v8 = vld [vmem:[%s1618_s1 + $0xd8] sm:$0xff]  ;;  %v301_v10 = vld [vmem:[%s1618_s1 + $0xd0] sm:$0xff]  ;;  %s1203_s17 = scalar_lea.vmem %s1624_s7, %s933_s10  ;;  %s269_s16 = scalar_lea.vmem %s1617_s0, %s933_s10  ;;  %v1092_v1 = vmov 0.0  }
   0xe   : > { %437 = vmatpush1.msra.mxu1 %v422_v3  ;;  %v420_v7 = vld [vmem:[%s1621_s4 + $0xe0] sm:$0xff]  ;;  %321 = vmatprep.subr.mxu0 %v304_v4  ;;  %v419_v9 = vld [vmem:[%s1621_s4 + $0xd8] sm:$0xff]  ;;  %v418_v11 = vld [vmem:[%s1621_s4 + $0xd0] sm:$0xff] }
   0xf   : > { %438 = vmatprep.subr.mxu1 %v421_v5  ;;  %322 = vmatpush1.msra.mxu0 %v303_v6  ;;  %v300_v12 = vld [vmem:[%s1618_s1 + $0xc8] sm:$0xff]  ;;  %v299_v14 = vld [vmem:[%s1618_s1 + $0xc0] sm:$0xff]  ;;  %v298_v16 = vld [vmem:[%s1618_s1 + $0xb8] sm:$0xff] }
  0x10   : > { %439 = vmatpush1.msra.mxu1 %v420_v7  ;;  %v417_v13 = vld [vmem:[%s1621_s4 + $0xc8] sm:$0xff]  ;;  %323 = vmatprep.subr.mxu0 %v302_v8  ;;  %v416_v15 = vld [vmem:[%s1621_s4 + $0xc0] sm:$0xff]  ;;  %v415_v17 = vld [vmem:[%s1621_s4 + $0xb8] sm:$0xff] }
  0x11   : > { %440 = vmatprep.subr.mxu1 %v419_v9  ;;  %324 = vmatpush1.msra.mxu0 %v301_v10  ;;  %v297_v18 = vld [vmem:[%s1618_s1 + $0xb0] sm:$0xff]  ;;  %v296_v20 = vld [vmem:[%s1618_s1 + $0xa8] sm:$0xff]  ;;  %v295_v22 = vld [vmem:[%s1618_s1 + $0xa0] sm:$0xff] }
  0x12   : > { %441 = vmatpush1.msra.mxu1 %v418_v11  ;;  %325 = vmatprep.subr.mxu0 %v300_v12  ;;  %v414_v19 = vld [vmem:[%s1621_s4 + $0xb0] sm:$0xff]  ;;  %v413_v21 = vld [vmem:[%s1621_s4 + $0xa8] sm:$0xff]  ;;  %v412_v23 = vld [vmem:[%s1621_s4 + $0xa0] sm:$0xff] }
  0x13   : > { %442 = vmatprep.subr.mxu1 %v417_v13  ;;  %326 = vmatpush1.msra.mxu0 %v299_v14  ;;  %v294_v24 = vld [vmem:[%s1618_s1 + $0x98] sm:$0xff]  ;;  %v293_v26 = vld [vmem:[%s1618_s1 + $0x90] sm:$0xff]  ;;  %v292_v28 = vld [vmem:[%s1618_s1 + $0x88] sm:$0xff] }
  0x14   : > { %443 = vmatpush1.msra.mxu1 %v416_v15  ;;  %327 = vmatprep.subr.mxu0 %v298_v16  ;;  %v411_v25 = vld [vmem:[%s1621_s4 + $0x98] sm:$0xff]  ;;  %v410_v27 = vld [vmem:[%s1621_s4 + $0x90] sm:$0xff]  ;;  %v409_v29 = vld [vmem:[%s1621_s4 + $0x88] sm:$0xff] }
  0x15   : > { %444 = vmatprep.subr.mxu1 %v415_v17  ;;  %328 = vmatpush1.msra.mxu0 %v297_v18  ;;  %v291_v30 = vld [vmem:[%s1618_s1 + $0x80] sm:$0xff]  ;;  %v290_v32 = vld [vmem:[%s1618_s1 + $0x78] sm:$0xff]  ;;  %v289_v34 = vld [vmem:[%s1618_s1 + $0x70] sm:$0xff] }
  0x16   : > { %445 = vmatpush1.msra.mxu1 %v414_v19  ;;  %329 = vmatprep.subr.mxu0 %v296_v20  ;;  %v408_v31 = vld [vmem:[%s1621_s4 + $0x80] sm:$0xff]  ;;  %v407_v33 = vld [vmem:[%s1621_s4 + $0x78] sm:$0xff]  ;;  %v406_v35 = vld [vmem:[%s1621_s4 + $0x70] sm:$0xff] }
  0x17   : > { %446 = vmatprep.subr.mxu1 %v413_v21  ;;  %330 = vmatpush1.msra.mxu0 %v295_v22  ;;  %v288_v36 = vld [vmem:[%s1618_s1 + $0x68] sm:$0xff]  ;;  %v287_v38 = vld [vmem:[%s1618_s1 + $0x60] sm:$0xff]  ;;  %v286_v40 = vld [vmem:[%s1618_s1 + $0x58] sm:$0xff] }
  0x18   : > { %447 = vmatpush1.msra.mxu1 %v412_v23  ;;  %331 = vmatprep.subr.mxu0 %v294_v24  ;;  %v405_v37 = vld [vmem:[%s1621_s4 + $0x68] sm:$0xff]  ;;  %v404_v39 = vld [vmem:[%s1621_s4 + $0x60] sm:$0xff]  ;;  %v403_v41 = vld [vmem:[%s1621_s4 + $0x58] sm:$0xff] }
  0x19   : > { %448 = vmatprep.subr.mxu1 %v411_v25  ;;  %332 = vmatpush1.msra.mxu0 %v293_v26  ;;  %v285_v42 = vld [vmem:[%s1618_s1 + $0x50] sm:$0xff]  ;;  %v284_v44 = vld [vmem:[%s1618_s1 + $0x48] sm:$0xff]  ;;  %v283_v46 = vld [vmem:[%s1618_s1 + $0x40] sm:$0xff] }
  0x1a   : > { %449 = vmatpush1.msra.mxu1 %v410_v27  ;;  %333 = vmatprep.subr.mxu0 %v292_v28  ;;  %v402_v43 = vld [vmem:[%s1621_s4 + $0x50] sm:$0xff]  ;;  %v401_v45 = vld [vmem:[%s1621_s4 + $0x48] sm:$0xff]  ;;  %v400_v47 = vld [vmem:[%s1621_s4 + $0x40] sm:$0xff] }
  0x1b   : > { %450 = vmatprep.subr.mxu1 %v409_v29  ;;  %334 = vmatpush1.msra.mxu0 %v291_v30  ;;  %v282_v48 = vld [vmem:[%s1618_s1 + $0x38] sm:$0xff]  ;;  %v281_v50 = vld [vmem:[%s1618_s1 + $0x30] sm:$0xff]  ;;  %v280_v52 = vld [vmem:[%s1618_s1 + $0x28] sm:$0xff] }
  0x1c   : > { %451 = vmatpush1.msra.mxu1 %v408_v31  ;;  %335 = vmatprep.subr.mxu0 %v290_v32  ;;  %v399_v49 = vld [vmem:[%s1621_s4 + $0x38] sm:$0xff]  ;;  %v398_v51 = vld [vmem:[%s1621_s4 + $0x30] sm:$0xff]  ;;  %v397_v53 = vld [vmem:[%s1621_s4 + $0x28] sm:$0xff] }
  0x1d   : > { %452 = vmatprep.subr.mxu1 %v407_v33  ;;  %336 = vmatpush1.msra.mxu0 %v289_v34  ;;  %v279_v54 = vld [vmem:[%s1618_s1 + $0x20] sm:$0xff]  ;;  %v278_v56 = vld [vmem:[%s1618_s1 + $0x18] sm:$0xff]  ;;  %v277_v58 = vld [vmem:[%s1618_s1 + $0x10] sm:$0xff]  ;;  %v309_v34 = vlaneseq }
  0x1e   : > { %453 = vmatpush1.msra.mxu1 %v406_v35  ;;  %337 = vmatprep.subr.mxu0 %v288_v36  ;;  %v396_v55 = vld [vmem:[%s1621_s4 + $0x20] sm:$0xff]  ;;  %v395_v57 = vld [vmem:[%s1621_s4 + $0x18] sm:$0xff]  ;;  %v394_v59 = vld [vmem:[%s1621_s4 + $0x10] sm:$0xff] }
  0x1f   : > { %454 = vmatprep.subr.mxu1 %v405_v37  ;;  %338 = vmatpush1.msra.mxu0 %v287_v38  ;;  %v276_v60 = vld [vmem:[%s1618_s1 + $0x8] sm:$0xff]  ;;  %v275_v62 = vld [vmem:[%s1618_s1] sm:$0xff]  ;;  %v1367_v4 = vld [vmem:[%s1619_s2 + $0x10] sm:$0xff]  ;;  %v1514_v35 = vshrl.u32 %v309_v34, 7 }
  0x20   : > { %455 = vmatpush1.msra.mxu1 %v404_v39  ;;  %339 = vmatprep.subr.mxu0 %v286_v40  ;;  %v393_v61 = vld [vmem:[%s1621_s4 + $0x8] sm:$0xff]  ;;  %v392_v63 = vld [vmem:[%s1621_s4] sm:$0xff]  ;;  %v1372_v5 = vld [vmem:[%s1619_s2 + $0x18] sm:$0xff] }
  0x21   : > { %456 = vmatprep.subr.mxu1 %v403_v41  ;;  %340 = vmatpush1.msra.mxu0 %v285_v42  ;;  %v274_v0 = vld [vmem:[%s269_s16] sm:$0xff]  ;;  %v1362_v3 = vld [vmem:[%s1619_s2 + $0x8] sm:$0xff]  ;;  %v1387_v8 = vld [vmem:[%s1619_s2 + $0x30] sm:$0xff]  ;;  %v311_v36 = vsub.s32 0, %v1514_v35  ;;  %v315_v39 = vsub.s32 1, %v1514_v35 }
  0x22   : > { %457 = vmatpush1.msra.mxu1 %v402_v43  ;;  %341 = vmatprep.subr.mxu0 %v284_v44  ;;  %v1357_v2 = vld [vmem:[%s1619_s2] sm:$0xff]  ;;  %v1382_v7 = vld [vmem:[%s1619_s2 + $0x28] sm:$0xff]  ;;  %v1392_v9 = vld [vmem:[%s1619_s2 + $0x38] sm:$0xff] }
  0x23   : > { %458 = vmatprep.subr.mxu1 %v401_v45  ;;  %342 = vmatpush1.msra.mxu0 %v283_v46  ;;  %v1377_v6 = vld [vmem:[%s1619_s2 + $0x20] sm:$0xff]  ;;  %v1402_v11 = vld [vmem:[%s1619_s2 + $0x48] sm:$0xff]  ;;  %v1407_v12 = vld [vmem:[%s1619_s2 + $0x50] sm:$0xff] }
  0x24   : > { %459 = vmatpush1.msra.mxu1 %v400_v47  ;;  %343 = vmatprep.subr.mxu0 %v282_v48  ;;  %v1397_v10 = vld [vmem:[%s1619_s2 + $0x40] sm:$0xff]  ;;  %v1412_v13 = vld [vmem:[%s1619_s2 + $0x58] sm:$0xff]  ;;  %v1422_v15 = vld [vmem:[%s1619_s2 + $0x68] sm:$0xff] }
  0x25   : > { %460 = vmatprep.subr.mxu1 %v399_v49  ;;  %344 = vmatpush1.msra.mxu0 %v281_v50  ;;  %v1417_v14 = vld [vmem:[%s1619_s2 + $0x60] sm:$0xff]  ;;  %v1427_v16 = vld [vmem:[%s1619_s2 + $0x70] sm:$0xff]  ;;  %v1432_v17 = vld [vmem:[%s1619_s2 + $0x78] sm:$0xff] }
  0x26   : > { %461 = vmatpush1.msra.mxu1 %v398_v51  ;;  %345 = vmatprep.subr.mxu0 %v280_v52  ;;  %v1437_v18 = vld [vmem:[%s1622_s5] sm:$0xff]  ;;  %v1442_v19 = vld [vmem:[%s1622_s5 + $0x8] sm:$0xff]  ;;  %v1447_v20 = vld [vmem:[%s1622_s5 + $0x10] sm:$0xff]  ;;  %v1524_v52 = vmov 0.0  }
  0x27   : > { %462 = vmatprep.subr.mxu1 %v397_v53  ;;  %346 = vmatpush1.msra.mxu0 %v279_v54  ;;  %v1452_v21 = vld [vmem:[%s1622_s5 + $0x18] sm:$0xff]  ;;  %v1457_v22 = vld [vmem:[%s1622_s5 + $0x20] sm:$0xff]  ;;  %v1462_v23 = vld [vmem:[%s1622_s5 + $0x28] sm:$0xff]  ;;  %v1526_v53 = vmov 0.0  }
  0x28   : > { %463 = vmatpush1.msra.mxu1 %v396_v55  ;;  %347 = vmatprep.subr.mxu0 %v278_v56  ;;  %v1467_v24 = vld [vmem:[%s1622_s5 + $0x30] sm:$0xff]  ;;  %v1472_v25 = vld [vmem:[%s1622_s5 + $0x38] sm:$0xff]  ;;  %v1477_v26 = vld [vmem:[%s1622_s5 + $0x40] sm:$0xff] }
  0x29   : > { %464 = vmatprep.subr.mxu1 %v395_v57  ;;  %348 = vmatpush1.msra.mxu0 %v277_v58  ;;  %v1482_v27 = vld [vmem:[%s1622_s5 + $0x48] sm:$0xff]  ;;  %v1487_v28 = vld [vmem:[%s1622_s5 + $0x50] sm:$0xff]  ;;  %v1492_v29 = vld [vmem:[%s1622_s5 + $0x58] sm:$0xff] }
  0x2a   : > { %465 = vmatpush1.msra.mxu1 %v394_v59  ;;  %349 = vmatprep.subr.mxu0 %v276_v60  ;;  %v1497_v30 = vld [vmem:[%s1622_s5 + $0x60] sm:$0xff]  ;;  %v1502_v31 = vld [vmem:[%s1622_s5 + $0x68] sm:$0xff]  ;;  %v1507_v32 = vld [vmem:[%s1622_s5 + $0x70] sm:$0xff] }
  0x2b   : > { %466 = vmatprep.subr.mxu1 %v393_v61  ;;  %350 = vmatpush1.msra.mxu0 %v275_v62  ;;  %v1512_v33 = vld [vmem:[%s1622_s5 + $0x78] sm:$0xff]  ;;  %v307_v37 = vld [vmem:[%s1620_s3] sm:$0x3] }
  0x2c   : > { %383 = vmatprep.mubr.f32.mxu0 %v1092_v1  ;;  %467 = vmatpush1.msra.mxu1 %v392_v63  ;;  %v424_v38 = vld [vmem:[%s1623_s6] sm:$0x3]  ;;  %v312_v40 = vrot.slane %v307_v37, %v311_v36  ;;  %v316_v42 = vrot.slane %v307_v37, %v315_v39 }
  0x2d   : > { %500 = vmatprep.mubr.f32.mxu1 %v1092_v1  ;;  %384 = vmatmul.mubr.f32.vlgmr.msra.gmra.mxu0 %v274_v0  ;;  %v429_v41 = vrot.slane %v424_v38, %v311_v36  ;;  %v433_v43 = vrot.slane %v424_v38, %v315_v39 }
  0x2e   : > { %501 = vmatmul.mubr.f32.vlgmr.msra.gmra.mxu1 %v274_v0 }
  0xed   : > { %v385_v44 = vpop.f32.mrf.mxu0 }
  0xee   : > { %v502_v45 = vpop.f32.mrf.mxu1  ;;  %v386_v46 = vadd.f32 %v385_v44, %v312_v40 }
  0xef   : > { %v503_v47 = vadd.f32 %v502_v45, %v429_v41  ;;  %v387_v48 = vpop.f32.mrf.mxu0 }
  0xf0   : > { %v504_v49 = vpop.f32.mrf.mxu1  ;;  %390 = vst [vmem:[#allocation2] sm:$0xff] %v386_v46  ;;  %v388_v50 = vadd.f32 %v387_v48, %v316_v42 }
  0xf1   : > { %507 = vst [vmem:[#allocation3] sm:$0xff] %v503_v47  ;;  %v505_v51 = vadd.f32 %v504_v49, %v433_v43 }
  0xf2   : > { %391 = vst [vmem:[#allocation2 + $0x8] sm:$0xff] %v388_v50 }
  0xf3   : > { %508 = vst [vmem:[#allocation3 + $0x8] sm:$0xff] %v505_v51 }
  0xf4 LB: >> { %578 = vmatprep.subr.mxu0 %v1432_v17  ;;  %v1093_v54 = vmov 0.0   ;;  %vm558_vm0 = vcmask 523264   ;;  %v1094_v55 = vmov 1966171168   ;;  %s549_s28 = sshra.s32 %s1078_s27, 3  ;;  %s552_s29 = sand.u32 7, %s1078_s27  ;;  %s1078_s27 = sphi %s1528_s27, %s546_s27   ;;  %v1074_v53 = vphi %v1526_v53, %v684_v53   ;;  %v1070_v52 = vphi %v1524_v52, %v678_v52  }
  0xf5   : >> { %579 = vmatpush1.msra.mxu0 %v1427_v16  ;;  %626 = vmatprep.mubr.f32.mxu0 %v1093_v54  ;;  %v637_v56 = vunpack.c.l.s4 %v1094_v55  ;;  %s947_s30 = sshll.u32 %s549_s28, 4  ;;  %s1095_s11 = smov 64   ;;  %vm686_vm1 = vcmask 516096  }
  0xf6   : >> { %580 = vmatprep.subr.mxu0 %v1422_v15  ;;  %s555_s8 = sadd.s32 %s947_s30, %s552_s29  ;;  %s685_s12 = scalar_lea.vmem [#allocation4], %s1078_s27 }
  0xf7   : >> { %581 = vmatpush1.msra.mxu0 %v1417_v14  ;;  %v638_v57 = vunpack.c.0.s8 %v637_v56  ;;  %s556_s9 = scalar_lea.vmem [#allocation2], %s555_s8  ;;  %s546_s27 = sadd.s32 1, %s1078_s27  }
  0xf8   : >> { %582 = vmatprep.subr.mxu0 %v1412_v13  ;;  %p543_p4 = scmp.ge.s32.totalorder %s546_s27, 8  }
  0xf9   : >> { %583 = vmatpush1.msra.mxu0 %v1407_v12  ;;  %v1555_v59 = vsub.s32 %v638_v57, %v1514_v35  ;;  %v557_v63 = vld [vmem:[%s556_s9] ss:$8 sm:$0x3]  ;;  %v1568_v54 = vmov (%p543_p4), 0.0   ;;  %v1570_v55 = vmov (%p543_p4), 0.0   ;;  %s1572_s13 = smov (%p543_p4), 0  }
  0xfa   : >> { %584 = vmatprep.subr.mxu0 %v1402_v11 }
  0xfb   : >> { %585 = vmatpush1.msra.mxu0 %v1397_v10 }
  0xfc   : >> { %586 = vmatprep.subr.mxu0 %v1392_v9 }
  0xfd   : >> { %587 = vmatpush1.msra.mxu0 %v1387_v8 }
  0xfe   : >> { %588 = vmatprep.subr.mxu0 %v1382_v7 }
  0xff   : >> { %589 = vmatpush1.msra.mxu0 %v1377_v6 }
 0x100   : >> { %590 = vmatprep.subr.mxu0 %v1372_v5 }
 0x101   : >> { %591 = vmatpush1.msra.mxu0 %v1367_v4 }
 0x102   : >> { %592 = vmatprep.subr.mxu0 %v1362_v3 }
 0x103   : >> { %593 = vmatpush1.msra.mxu0 %v1357_v2 }
 0x104   : >> { %937 = vmatmul.mubr.msk.f32.vlgmr.msra.gmra.mxu0 %vm558_vm0, %v1074_v53 }
 0x1c4   : >> { %v628_v58 = vpop.f32.mrf.mxu0 }
 0x1c6   : >> { %v630_v60 = vpop.f32.mrf.mxu0 }
 0x1c7   : >> { %v635_v61 = vcombine.low %v628_v58, %v630_v60 }
 0x1c9   : >> { %v642_v62 = vrot.slane %v635_v61, %v1555_v59 }
 0x1cb   : >> { %v649_v0 = vrot.slane %v642_v62, %v1555_v59 }
 0x1cd   : >> { %v651_v1 = vadd.f32 %v649_v0, %v557_v63 }
 0x1cf   : >> { %v938_v34 = vmul.f32 -1.442695, %v651_v1  ;;  %v659_v36 = vrot.slane %v651_v1, 1 }
 0x1d1   : >> { %1012 = vpow2.f32 %v938_v34 }
 0x1d2   : >> { %1014 = vtanh.f32 %v659_v36 }
 0x1de   : >> { %v1013_v37 = vpop.eup %1012 }
 0x1df   : >> { %v655_v38 = vadd.f32 1.0, %v1013_v37  ;;  %v1015_v39 = vpop.eup %1014 }
 0x1e1   : >> { %1016 = vrcp.f32 %v655_v38 }
 0x1ee   : >> { %v1017_v40 = vpop.eup %1016 }
 0x1ef   : >> { %v673_v41 = vmul.f32 %v1017_v40, %v1015_v39  ;;  %v672_v42 = vmul.f32 %v1070_v52, %v1017_v40 }
 0x1f1   : >> { %675 = vrot.lane.b32.xlu0 %v673_v41, %s1095_s11 }
 0x1f5   : >> { %662 = vrot.lane.b32.xlu0 %v651_v1, %s1095_s11 }
 0x263   : >> { %v676_v43 = vpop.permute.xlu0 %675 }
 0x264   : >> { %v678_v52 = vadd.f32 %v676_v43, %v672_v42  }
 0x266   : >> { %1018 = vtanh.f32 %v678_v52 }
 0x267   : >> { %v663_v45 = vpop.permute.xlu0 %662 }
 0x268   : >> { %v664_v46 = vrot.slane %v663_v45, 1 }
 0x26a   : >> { %v939_v47 = vmul.f32 -1.442695, %v664_v46 }
 0x26c   : >> { %1020 = vpow2.f32 %v939_v47 }
 0x273   : >> { %v1019_v44 = vpop.eup %1018 }
 0x274   : >> { %681 = vrot.lane.b32.xlu1 %v1019_v44, %s1095_s11 }
 0x279   : >> { %v1021_v48 = vpop.eup %1020 }
 0x27a   : >> { %v669_v49 = vadd.f32 1.0, %v1021_v48 }
 0x27c   : >> { %1022 = vrcp.f32 %v669_v49 }
 0x289   : >> { %v1023_v50 = vpop.eup %1022 }
 0x2e5   : > { %545 = sbr.rel (!%p543_p4) target bundleno = 244 (0xf4), region = 96 }
 0x2e6   : >> { %v682_v51 = vpop.permute.xlu1 %681 }
 0x2e7   : >> { %v684_v53 = vmul.f32 %v1023_v50, %v682_v51  }
 0x2e9   : >> { %687 = vst.msk [vmem:[%s685_s12] sm:$0x1] %vm686_vm1, %v684_v53 }
 0x2ea LB: >> { %726 = vmatprep.subr.mxu0 %v1512_v33  ;;  %v1096_v53 = vmov 0.0   ;;  %s1597_s14 = ssub.s32 7, %s1090_s13  ;;  %s1097_s21 = smov 64   ;;  %s1090_s13 = sphi %s1572_s13, %s693_s13   ;;  %v1086_v55 = vphi %v1570_v55, %v832_v55   ;;  %v1082_v54 = vphi %v1568_v54, %v826_v54  }
 0x2eb   : >> { %727 = vmatpush1.msra.mxu0 %v1507_v32  ;;  %774 = vmatprep.mubr.f32.mxu0 %v1096_v53  ;;  %s697_s15 = sshra.s32 %s1597_s14, 3  ;;  %s700_s16 = sand.u32 7, %s1597_s14 }
 0x2ec   : >> { %728 = vmatprep.subr.mxu0 %v1502_v31  ;;  %s948_s18 = sshll.u32 %s697_s15, 4  ;;  %s833_s25 = scalar_lea.vmem [#allocation5], %s1597_s14 }
 0x2ed   : >> { %729 = vmatpush1.msra.mxu0 %v1497_v30  ;;  %s703_s19 = sadd.s32 %s948_s18, %s700_s16  ;;  %s693_s13 = sadd.s32 1, %s1090_s13  }
 0x2ee   : >> { %730 = vmatprep.subr.mxu0 %v1492_v29  ;;  %s704_s20 = scalar_lea.vmem [#allocation3], %s703_s19  ;;  %p690_p5 = scmp.ge.s32.totalorder %s693_s13, 8  }
 0x2ef   : >> { %731 = vmatpush1.msra.mxu0 %v1487_v28  ;;  %v705_v6 = vld [vmem:[%s704_s20] ss:$8 sm:$0x3]  ;;  %s1098_s10 = smov (%p690_p5), 64  }
 0x2f0   : >> { %732 = vmatprep.subr.mxu0 %v1482_v27  ;;  %v836_v0 = vld [vmem:[#allocation4] sm:$0xff] (%p690_p5) }
 0x2f1   : >> { %733 = vmatpush1.msra.mxu0 %v1477_v26 }
 0x2f2   : >> { %734 = vmatprep.subr.mxu0 %v1472_v25 }
 0x2f3   : >> { %735 = vmatpush1.msra.mxu0 %v1467_v24 }
 0x2f4   : >> { %736 = vmatprep.subr.mxu0 %v1462_v23 }
 0x2f5   : >> { %737 = vmatpush1.msra.mxu0 %v1457_v22 }
 0x2f6   : >> { %738 = vmatprep.subr.mxu0 %v1452_v21 }
 0x2f7   : >> { %739 = vmatpush1.msra.mxu0 %v1447_v20 }
 0x2f8   : >> { %740 = vmatprep.subr.mxu0 %v1442_v19 }
 0x2f9   : >> { %741 = vmatpush1.msra.mxu0 %v1437_v18 }
 0x2fa   : >> { %942 = vmatmul.mubr.msk.f32.vlgmr.msra.gmra.mxu0 %vm558_vm0, %v1086_v55 }
 0x3ba   : >> { %v776_v2 = vpop.f32.mrf.mxu0 }
 0x3bc   : >> { %v778_v3 = vpop.f32.mrf.mxu0 }
 0x3bd   : >> { %v783_v4 = vcombine.low %v776_v2, %v778_v3 }
 0x3bf   : >> { %v790_v5 = vrot.slane %v783_v4, %v1555_v59 }
 0x3c1   : >> { %v797_v7 = vrot.slane %v790_v5, %v1555_v59 }
 0x3c3   : >> { %v799_v8 = vadd.f32 %v797_v7, %v705_v6 }
 0x3c5   : >> { %v943_v9 = vmul.f32 -1.442695, %v799_v8  ;;  %v807_v10 = vrot.slane %v799_v8, 1 }
 0x3c7   : >> { %1024 = vpow2.f32 %v943_v9 }
 0x3c8   : >> { %1026 = vtanh.f32 %v807_v10 }
 0x3d4   : >> { %v1025_v11 = vpop.eup %1024 }
 0x3d5   : >> { %v803_v12 = vadd.f32 1.0, %v1025_v11  ;;  %v1027_v13 = vpop.eup %1026 }
 0x3d7   : >> { %1028 = vrcp.f32 %v803_v12 }
 0x3e4   : >> { %v1029_v14 = vpop.eup %1028 }
 0x3e5   : >> { %v821_v15 = vmul.f32 %v1029_v14, %v1027_v13  ;;  %v820_v16 = vmul.f32 %v1082_v54, %v1029_v14 }
 0x3e7   : >> { %823 = vrot.lane.b32.xlu0 %v821_v15, %s1097_s21 }
 0x3eb   : >> { %810 = vrot.lane.b32.xlu0 %v799_v8, %s1097_s21 }
 0x459   : >> { %v824_v17 = vpop.permute.xlu0 %823 }
 0x45a   : >> { %v826_v54 = vadd.f32 %v824_v17, %v820_v16  }
 0x45c   : >> { %1030 = vtanh.f32 %v826_v54 }
 0x45d   : >> { %v811_v52 = vpop.permute.xlu0 %810 }
 0x45e   : >> { %v812_v56 = vrot.slane %v811_v52, 1 }
 0x460   : >> { %v944_v57 = vmul.f32 -1.442695, %v812_v56 }
 0x462   : >> { %1032 = vpow2.f32 %v944_v57 }
 0x469   : >> { %v1031_v35 = vpop.eup %1030 }
 0x46a   : >> { %829 = vrot.lane.b32.xlu1 %v1031_v35, %s1097_s21 }
 0x46f   : >> { %v1033_v58 = vpop.eup %1032 }
 0x470   : >> { %v817_v60 = vadd.f32 1.0, %v1033_v58 }
 0x472   : >> { %1034 = vrcp.f32 %v817_v60 }
 0x47f   : >> { %v1035_v61 = vpop.eup %1034 }
 0x4db   : > { %692 = sbr.rel (!%p690_p5) target bundleno = 746 (0x2ea), region = 107 }
 0x4dc   : >> { %v830_v62 = vpop.permute.xlu1 %829 }
 0x4dd   : >> { %v832_v55 = vmul.f32 %v1035_v61, %v830_v62  }
 0x4df   : >> { %835 = vst.msk [vmem:[%s833_s25] sm:$0x1] %vm686_vm1, %v832_v55 }
 0x4e6   : > { %v837_v63 = vld [vmem:[#allocation5] sm:$0xff] }
 0x4e7   : > { %839 = vrot.lane.b32.xlu0 %v837_v63, %s1098_s10 }
 0x559   : > { %v840_v1 = vpop.permute.xlu0 %839 }
 0x55a   : > { %v843_v34 = vsel %vm558_vm0, %v836_v0, %v840_v1 }
 0x55b   : > { %844 = vst [vmem:[%s1203_s17] sm:$0xff] %v843_v34 }
 0x55c PF: > { %s17_s24 = sadd.s32 1, %s1066_s24  }
 0x55d   : > { %p14_p6 = scmp.ge.s32.totalorder %s17_s24, 4  }
 0x55f   :  { %16 = sbr.rel (!%p14_p6) target bundleno = 1 (0x1), region = 118 }

// kernel: audio_expert_forward.3
= control target key start
LH: loop header
LB: loop body
LE: loop exit
PB: predicated region body
PF: predicated region fallthrough
CT: control target
= control target key end

     0   :  { %s1182_s18 = smov 0   ;;  %s1529_s0 = inlined_call_operand.vmem [shape: f32[2,10,128], index: 0, kind: input, shape index: {}]   ;;  %s1530_s1 = inlined_call_operand.vmem [shape: f32[3,128,64], index: 1, kind: input, shape index: {}]   ;;  %s1531_s2 = inlined_call_operand.vmem [shape: f32[1,64], index: 2, kind: input, shape index: {}]   ;;  %s1532_s3 = inlined_call_operand.vmem [shape: f32[3,64,128], index: 3, kind: input, shape index: {}]   ;;  %s1533_s4 = inlined_call_operand.vmem [shape: f32[1,128], index: 4, kind: input, shape index: {}]   ;;  %s1534_s5 = inlined_call_operand.vmem [shape: f32[2,8,128], index: 5, kind: output, shape index: {}]  }
   0x1 LB: > { %s828_s19 = sadd.s32 4294967295, %s1148_s18   ;;  %p832_p0 = scmp.ge.s32.totalorder %s1148_s18, 1  ;;  %s1148_s18 = sphi %s1182_s18, %s15_s18  }
   0x2   : > { %p187_p1 = scmp.lt.s32.totalorder %s1148_s18, 3 }
   0x4   : > { %p188_p2 = pnand %p832_p0, %p187_p1 }
   0x5   : > { %p214_p3 = scmp.lt.s32.totalorder (!%p188_p2), %s828_s19, 1 }
   0x6   : > { %191 = sbr.rel (%p188_p2) target bundleno = 500 (0x1f4), region = 40 }
   0xb   : > { %v851_v0 = vld [vmem:[%s1530_s1 + $0xf8] sm:$0xff]  ;;  %v1150_v2 = vmov 0.0   ;;  %v850_v3 = vld [vmem:[%s1530_s1 + $0xf0] sm:$0xff]  ;;  %v849_v5 = vld [vmem:[%s1530_s1 + $0xe8] sm:$0xff]  ;;  %s1536_s19 = smov (!%p214_p3, %s828_s19), 1  ;;  %vm260_vm0 = vcmask 1046528  }
   0xc   : > { %v240_v1 = vld [vmem:[%s1530_s1 + $0x78] sm:$0xff]  ;;  %970 = vmatprep.subr.mxu0 %v1150_v2  ;;  %1005 = vmatprep.subr.mxu1 %v1150_v2  ;;  %v239_v4 = vld [vmem:[%s1530_s1 + $0x70] sm:$0xff]  ;;  %v238_v6 = vld [vmem:[%s1530_s1 + $0x68] sm:$0xff]  ;;  %s891_s12 = sshll.u32 %s1536_s19, 4  ;;  %vm1151_vm1 = vmmov 0   ;;  %vm422_vm2 = vcmask 1045504  }
   0xd   : > { %971 = vmatpush3.msra.mxu0 %v851_v0  ;;  %1006 = vmatpush3.msra.mxu1 %v240_v1  ;;  %v848_v7 = vld [vmem:[%s1530_s1 + $0xe0] sm:$0xff]  ;;  %v847_v9 = vld [vmem:[%s1530_s1 + $0xd8] sm:$0xff]  ;;  %v846_v11 = vld [vmem:[%s1530_s1 + $0xd0] sm:$0xff]  ;;  %s218_s21 = scalar_lea.vmem %s1529_s0, %s891_s12  ;;  %vm510_vm3 = vcmask 1040384   ;;  %vm535_vm4 = vcmask 523264   ;;  %s835_s9 = sshll.u32 %s1536_s19, 3 }
   0xe   : > { %972 = vmatprep.subr.mxu0 %v1150_v2  ;;  %1007 = vmatprep.subr.mxu1 %v1150_v2  ;;  %v237_v8 = vld [vmem:[%s1530_s1 + $0x60] sm:$0xff]  ;;  %v236_v10 = vld [vmem:[%s1530_s1 + $0x58] sm:$0xff]  ;;  %v235_v12 = vld [vmem:[%s1530_s1 + $0x50] sm:$0xff]  ;;  %s222_s12 = scalar_lea.vmem %s1534_s5, %s835_s9 }
   0xf   : > { %973 = vmatpush3.msra.mxu0 %v850_v3  ;;  %1008 = vmatpush3.msra.mxu1 %v239_v4  ;;  %v845_v13 = vld [vmem:[%s1530_s1 + $0xc8] sm:$0xff]  ;;  %v844_v15 = vld [vmem:[%s1530_s1 + $0xc0] sm:$0xff]  ;;  %v843_v17 = vld [vmem:[%s1530_s1 + $0xb8] sm:$0xff] }
  0x10   : > { %974 = vmatprep.subr.mxu0 %v1150_v2  ;;  %1009 = vmatprep.subr.mxu1 %v1150_v2  ;;  %v234_v14 = vld [vmem:[%s1530_s1 + $0x48] sm:$0xff]  ;;  %v233_v16 = vld [vmem:[%s1530_s1 + $0x40] sm:$0xff]  ;;  %v232_v18 = vld [vmem:[%s1530_s1 + $0x38] sm:$0xff] }
  0x11   : > { %975 = vmatpush3.msra.mxu0 %v849_v5  ;;  %1010 = vmatpush3.msra.mxu1 %v238_v6  ;;  %v842_v19 = vld [vmem:[%s1530_s1 + $0xb0] sm:$0xff]  ;;  %v841_v21 = vld [vmem:[%s1530_s1 + $0xa8] sm:$0xff]  ;;  %v840_v23 = vld [vmem:[%s1530_s1 + $0xa0] sm:$0xff] }
  0x12   : > { %976 = vmatprep.subr.mxu0 %v1150_v2  ;;  %1011 = vmatprep.subr.mxu1 %v1150_v2  ;;  %v231_v20 = vld [vmem:[%s1530_s1 + $0x30] sm:$0xff]  ;;  %v230_v22 = vld [vmem:[%s1530_s1 + $0x28] sm:$0xff]  ;;  %v229_v24 = vld [vmem:[%s1530_s1 + $0x20] sm:$0xff] }
  0x13   : > { %977 = vmatpush3.msra.mxu0 %v848_v7  ;;  %1012 = vmatpush3.msra.mxu1 %v237_v8  ;;  %v839_v25 = vld [vmem:[%s1530_s1 + $0x98] sm:$0xff]  ;;  %v1302_v27 = vld [vmem:[%s218_s21] sm:$0xff]  ;;  %v1304_v28 = vld [vmem:[%s218_s21 + $0x8] sm:$0x3] }
  0x14   : > { %978 = vmatprep.subr.mxu0 %v1150_v2  ;;  %1013 = vmatprep.subr.mxu1 %v1150_v2  ;;  %v228_v26 = vld [vmem:[%s1530_s1 + $0x18] sm:$0xff]  ;;  %v838_v29 = vld [vmem:[%s1530_s1 + $0x90] sm:$0xff]  ;;  %v261_v31 = vrot.slane %v1302_v27, 1  ;;  %v262_v32 = vrot.slane %v1304_v28, 1  ;;  %v837_v33 = vld [vmem:[%s1530_s1 + $0x88] sm:$0xff]  ;;  %v423_v52 = vrot.slane %v1302_v27, 2 }
  0x15   : > { %979 = vmatpush3.msra.mxu0 %v847_v9  ;;  %1014 = vmatpush3.msra.mxu1 %v236_v10  ;;  %v227_v30 = vld [vmem:[%s1530_s1 + $0x10] sm:$0xff]  ;;  %v226_v34 = vld [vmem:[%s1530_s1 + $0x8] sm:$0xff]  ;;  %v836_v35 = vld [vmem:[%s1530_s1 + $0x80] sm:$0xff]  ;;  %v424_v53 = vrot.slane %v1304_v28, 2 }
  0x16   : > { %980 = vmatprep.subr.mxu0 %v1150_v2  ;;  %1015 = vmatprep.subr.mxu1 %v1150_v2  ;;  %v263_v36 = vsel %vm260_vm0, %v261_v31, %v262_v32  ;;  %v225_v37 = vld [vmem:[%s1530_s1] sm:$0xff]  ;;  %v867_v38 = vld [vmem:[%s1530_s1 + $0x178] sm:$0xff]  ;;  %v866_v39 = vld [vmem:[%s1530_s1 + $0x170] sm:$0xff] }
  0x17   : > { %981 = vmatpush3.msra.mxu0 %v846_v11  ;;  %1016 = vmatpush3.msra.mxu1 %v235_v12  ;;  %v865_v40 = vld [vmem:[%s1530_s1 + $0x168] sm:$0xff]  ;;  %v864_v41 = vld [vmem:[%s1530_s1 + $0x160] sm:$0xff]  ;;  %v863_v42 = vld [vmem:[%s1530_s1 + $0x158] sm:$0xff]  ;;  %v425_v56 = vsel %vm422_vm2, %v423_v52, %v424_v53 }
  0x18   : > { %982 = vmatprep.subr.mxu0 %v1150_v2  ;;  %1017 = vmatprep.subr.mxu1 %v1150_v2  ;;  %v862_v43 = vld [vmem:[%s1530_s1 + $0x150] sm:$0xff]  ;;  %v861_v44 = vld [vmem:[%s1530_s1 + $0x148] sm:$0xff]  ;;  %v860_v45 = vld [vmem:[%s1530_s1 + $0x140] sm:$0xff] }
  0x19   : > { %983 = vmatpush3.msra.mxu0 %v845_v13  ;;  %1018 = vmatpush3.msra.mxu1 %v234_v14  ;;  %v859_v46 = vld [vmem:[%s1530_s1 + $0x138] sm:$0xff]  ;;  %v858_v47 = vld [vmem:[%s1530_s1 + $0x130] sm:$0xff]  ;;  %v857_v48 = vld [vmem:[%s1530_s1 + $0x128] sm:$0xff] }
  0x1a   : > { %984 = vmatprep.subr.mxu0 %v1150_v2  ;;  %1019 = vmatprep.subr.mxu1 %v1150_v2  ;;  %v856_v49 = vld [vmem:[%s1530_s1 + $0x120] sm:$0xff]  ;;  %v855_v50 = vld [vmem:[%s1530_s1 + $0x118] sm:$0xff]  ;;  %v854_v51 = vld [vmem:[%s1530_s1 + $0x110] sm:$0xff] }
  0x1b   : > { %985 = vmatpush3.msra.mxu0 %v844_v15  ;;  %1020 = vmatpush3.msra.mxu1 %v233_v16  ;;  %v853_v54 = vld [vmem:[%s1530_s1 + $0x108] sm:$0xff]  ;;  %v852_v55 = vld [vmem:[%s1530_s1 + $0x100] sm:$0xff]  ;;  %v876_v57 = vld [vmem:[%s1532_s3 + $0x78] sm:$0xff] }
  0x1c   : > { %986 = vmatprep.subr.mxu0 %v1150_v2  ;;  %1021 = vmatprep.subr.mxu1 %v1150_v2  ;;  %v886_v58 = vld [vmem:[%s1532_s3 + $0xb8] sm:$0xff]  ;;  %v875_v59 = vld [vmem:[%s1532_s3 + $0x70] sm:$0xff]  ;;  %v874_v61 = vld [vmem:[%s1532_s3 + $0x68] sm:$0xff] }
  0x1d   : > { %987 = vmatpush3.msra.mxu0 %v843_v17  ;;  %1022 = vmatpush3.msra.mxu1 %v232_v18  ;;  %v885_v60 = vld [vmem:[%s1532_s3 + $0xb0] sm:$0xff]  ;;  %v884_v62 = vld [vmem:[%s1532_s3 + $0xa8] sm:$0xff]  ;;  %v873_v63 = vld [vmem:[%s1532_s3 + $0x60] sm:$0xff] }
  0x1e   : > { %988 = vmatprep.subr.mxu0 %v1150_v2  ;;  %1023 = vmatprep.subr.mxu1 %v1150_v2  ;;  %v883_v0 = vld [vmem:[%s1532_s3 + $0xa0] sm:$0xff]  ;;  %v872_v1 = vld [vmem:[%s1532_s3 + $0x58] sm:$0xff]  ;;  %v871_v4 = vld [vmem:[%s1532_s3 + $0x50] sm:$0xff] }
  0x1f   : > { %989 = vmatpush3.msra.mxu0 %v842_v19  ;;  %1024 = vmatpush3.msra.mxu1 %v231_v20  ;;  %v882_v3 = vld [vmem:[%s1532_s3 + $0x98] sm:$0xff]  ;;  %v881_v5 = vld [vmem:[%s1532_s3 + $0x90] sm:$0xff]  ;;  %v870_v6 = vld [vmem:[%s1532_s3 + $0x48] sm:$0xff] }
  0x20   : > { %990 = vmatprep.subr.mxu0 %v1150_v2  ;;  %1025 = vmatprep.subr.mxu1 %v1150_v2  ;;  %v880_v7 = vld [vmem:[%s1532_s3 + $0x88] sm:$0xff]  ;;  %v869_v8 = vld [vmem:[%s1532_s3 + $0x40] sm:$0xff]  ;;  %v520_v28 = vld [vmem:[%s1532_s3 + $0x38] sm:$0xff] }
  0x21   : > { %991 = vmatpush3.msra.mxu0 %v841_v21  ;;  %1026 = vmatpush3.msra.mxu1 %v230_v22  ;;  %v879_v9 = vld [vmem:[%s1532_s3 + $0x80] sm:$0xff]  ;;  %v519_v31 = vld [vmem:[%s1532_s3 + $0x30] sm:$0xff]  ;;  %v518_v32 = vld [vmem:[%s1532_s3 + $0x28] sm:$0xff] }
  0x22   : > { %992 = vmatprep.subr.mxu0 %v1150_v2  ;;  %1027 = vmatprep.subr.mxu1 %v1150_v2  ;;  %v868_v16 = vld [vmem:[%s1531_s2] ss:$0 sm:$0xff] }
  0x23   : > { %993 = vmatpush3.msra.mxu0 %v840_v23  ;;  %1028 = vmatpush3.msra.mxu1 %v229_v24 }
  0x24   : > { %994 = vmatprep.subr.mxu0 %v1150_v2  ;;  %1029 = vmatprep.subr.mxu1 %v1150_v2 }
  0x25   : > { %995 = vmatpush3.msra.mxu0 %v839_v25  ;;  %1030 = vmatpush3.msra.mxu1 %v228_v26 }
  0x26   : > { %996 = vmatprep.subr.mxu0 %v1150_v2  ;;  %1031 = vmatprep.subr.mxu1 %v1150_v2 }
  0x27   : > { %997 = vmatpush3.msra.mxu0 %v838_v29  ;;  %1032 = vmatpush3.msra.mxu1 %v227_v30 }
  0x28   : > { %998 = vmatprep.subr.mxu0 %v1150_v2  ;;  %1033 = vmatprep.subr.mxu1 %v1150_v2 }
  0x29   : > { %999 = vmatpush3.msra.mxu0 %v837_v33  ;;  %1034 = vmatpush3.msra.mxu1 %v226_v34  ;;  %v517_v33 = vld [vmem:[%s1532_s3 + $0x20] sm:$0xff]  ;;  %v516_v34 = vld [vmem:[%s1532_s3 + $0x18] sm:$0xff] }
  0x2a   : > { %1000 = vmatprep.subr.mxu0 %v1150_v2  ;;  %1002 = vmatprep.mubr.msk.f32.mxu0 %vm1151_vm1, %v1150_v2 }
  0x2b   : > { %1001 = vmatpush3.msra.mxu0 %v836_v35  ;;  %1035 = vmatprep.subr.mxu1 %v1150_v2  ;;  %v515_v35 = vld [vmem:[%s1532_s3 + $0x10] sm:$0xff] }
  0x2c   : > { %1003 = vmatmul.mubr.f32.vlgmr.msra.gmra.mxu0 %v263_v36  ;;  %1036 = vmatpush3.msra.mxu1 %v225_v37  ;;  %v514_v36 = vld [vmem:[%s1532_s3 + $0x8] sm:$0xff]  ;;  %v513_v37 = vld [vmem:[%s1532_s3] sm:$0xff] }
  0x2d   : > { %1037 = vmatprep.mubr.msk.f32.mxu1 %vm1151_vm1, %v1150_v2  ;;  %1040 = vmatprep.subr.mxu0 %v1150_v2 }
  0x2e   : > { %1038 = vmatmul.mubr.f32.vlgmr.msra.gmra.mxu1 %v1302_v27  ;;  %1041 = vmatpush3.msra.mxu0 %v867_v38 }
  0x2f   : > { %1042 = vmatprep.subr.mxu0 %v1150_v2  ;;  %1072 = vmatprep.mubr.msk.f32.mxu0 %vm1151_vm1, %v1150_v2 }
  0x30   : > { %1043 = vmatpush3.msra.mxu0 %v866_v39  ;;  %1075 = vmatprep.subr.mxu1 %v1150_v2 }
  0x31   : > { %1044 = vmatprep.subr.mxu0 %v1150_v2  ;;  %1091 = vmatprep.mubr.msk.f32.mxu1 %vm1151_vm1, %v1150_v2 }
  0x32   : > { %1045 = vmatpush3.msra.mxu0 %v865_v40  ;;  %1076 = vmatpush3.msra.mxu1 %v876_v57 }
  0x33   : > { %1046 = vmatprep.subr.mxu0 %v1150_v2  ;;  %1077 = vmatprep.subr.mxu1 %v1150_v2 }
  0x34   : > { %1047 = vmatpush3.msra.mxu0 %v864_v41  ;;  %1078 = vmatpush3.msra.mxu1 %v875_v59 }
  0x35   : > { %1048 = vmatprep.subr.mxu0 %v1150_v2  ;;  %1079 = vmatprep.subr.mxu1 %v1150_v2 }
  0x36   : > { %1049 = vmatpush3.msra.mxu0 %v863_v42  ;;  %1080 = vmatpush3.msra.mxu1 %v874_v61 }
  0x37   : > { %1050 = vmatprep.subr.mxu0 %v1150_v2  ;;  %1081 = vmatprep.subr.mxu1 %v1150_v2 }
  0x38   : > { %1051 = vmatpush3.msra.mxu0 %v862_v43  ;;  %1082 = vmatpush3.msra.mxu1 %v873_v63 }
  0x39   : > { %1052 = vmatprep.subr.mxu0 %v1150_v2  ;;  %1083 = vmatprep.subr.mxu1 %v1150_v2 }
  0x3a   : > { %1053 = vmatpush3.msra.mxu0 %v861_v44  ;;  %1084 = vmatpush3.msra.mxu1 %v872_v1  ;;  %v888_v44 = vld [vmem:[%s1533_s4] ss:$0 sm:$0xff] }
  0x3b   : > { %1054 = vmatprep.subr.mxu0 %v1150_v2  ;;  %1085 = vmatprep.subr.mxu1 %v1150_v2 }
  0x3c   : > { %1055 = vmatpush3.msra.mxu0 %v860_v45  ;;  %1086 = vmatpush3.msra.mxu1 %v871_v4 }
  0x3d   : > { %1056 = vmatprep.subr.mxu0 %v1150_v2  ;;  %1087 = vmatprep.subr.mxu1 %v1150_v2 }
  0x3e   : > { %1057 = vmatpush3.msra.mxu0 %v859_v46  ;;  %1088 = vmatpush3.msra.mxu1 %v870_v6 }
  0x3f   : > { %1058 = vmatprep.subr.mxu0 %v1150_v2  ;;  %1089 = vmatprep.subr.mxu1 %v1150_v2 }
  0x40   : > { %1059 = vmatpush3.msra.mxu0 %v858_v47  ;;  %1090 = vmatpush3.msra.mxu1 %v869_v8 }
  0x41   : > { %1060 = vmatprep.subr.mxu0 %v1150_v2  ;;  %1094 = vmatprep.subr.mxu1 %v1150_v2 }
  0x42   : > { %1061 = vmatpush3.msra.mxu0 %v857_v48 }
  0x43   : > { %1062 = vmatprep.subr.mxu0 %v1150_v2 }
  0x44   : > { %1063 = vmatpush3.msra.mxu0 %v856_v49 }
  0x45   : > { %1064 = vmatprep.subr.mxu0 %v1150_v2 }
  0x46   : > { %1065 = vmatpush3.msra.mxu0 %v855_v50 }
  0x47   : > { %1066 = vmatprep.subr.mxu0 %v1150_v2 }
  0x48   : > { %1067 = vmatpush3.msra.mxu0 %v854_v51 }
  0x49   : > { %1068 = vmatprep.subr.mxu0 %v1150_v2 }
  0x4a   : > { %1069 = vmatpush3.msra.mxu0 %v853_v54 }
  0x4b   : > { %1070 = vmatprep.subr.mxu0 %v1150_v2 }
  0x4c   : > { %1071 = vmatpush3.msra.mxu0 %v852_v55 }
  0x4d   : > { %1073 = vmatmul.mubr.f32.vlgmr.msra.gmra.mxu0 %v425_v56  ;;  %1113 = vmatprep.subr.mxu0 %v1150_v2 }
  0x4e   : > { %1129 = vmatprep.mubr.msk.f32.mxu0 %vm1151_vm1, %v1150_v2  ;;  %1114 = vmatpush3.msra.mxu0 %v886_v58 }
  0x4f   : > { %1115 = vmatprep.subr.mxu0 %v1150_v2 }
  0x50   : > { %1116 = vmatpush3.msra.mxu0 %v885_v60 }
  0x51   : > { %1117 = vmatprep.subr.mxu0 %v1150_v2 }
  0x52   : > { %1118 = vmatpush3.msra.mxu0 %v884_v62 }
  0x53   : > { %1119 = vmatprep.subr.mxu0 %v1150_v2 }
  0x54   : > { %1120 = vmatpush3.msra.mxu0 %v883_v0 }
  0x55   : > { %1121 = vmatprep.subr.mxu0 %v1150_v2 }
  0x56   : > { %1122 = vmatpush3.msra.mxu0 %v882_v3 }
  0x57   : > { %1123 = vmatprep.subr.mxu0 %v1150_v2 }
  0x58   : > { %1124 = vmatpush3.msra.mxu0 %v881_v5 }
  0x59   : > { %1125 = vmatprep.subr.mxu0 %v1150_v2 }
  0x5a   : > { %1126 = vmatpush3.msra.mxu0 %v880_v7 }
  0x5b   : > { %1127 = vmatprep.subr.mxu0 %v1150_v2 }
  0x5c   : > { %1128 = vmatpush3.msra.mxu0 %v879_v9 }
  0xec   : > { %v331_v10 = vpop.f32.mrf.mxu0 }
  0xee   : > { %v401_v11 = vpop.f32.mrf.mxu1  ;;  %v1004_v12 = vpop.f32.mrf.mxu0 }
  0xef   : > { %v402_v14 = vadd.f32 %v401_v11, %v331_v10 }
  0xf0   : > { %v1039_v13 = vpop.f32.mrf.mxu1 }
 0x10d   : > { %v493_v15 = vpop.f32.mrf.mxu0 }
 0x10e   : > { %v497_v17 = vadd.f32 %v493_v15, %v402_v14 }
 0x10f   : > { %v1074_v18 = vpop.f32.mrf.mxu0 }
 0x110   : > { %v505_v19 = vadd.f32 %v868_v16, %v497_v17 }
 0x112   : > { %v506_v20 = vmax.f32 %v505_v19, 0.0 }
 0x114   : > { %v508_v21 = vrot.slane %v506_v20, 7 }
 0x116   : > { %v511_v22 = vsel %vm510_vm3, 0.0, %v508_v21  ;;  %v512_v23 = vsel %vm510_vm3, %v508_v21, 0.0 }
 0x117   : > { %v532_v24 = vrot.slane %v511_v22, 1  ;;  %v533_v25 = vrot.slane %v512_v23, 1  ;;  %v689_v26 = vrot.slane %v511_v22, 2  ;;  %v690_v27 = vrot.slane %v512_v23, 2 }
 0x119   : > { %v534_v29 = vsel %vm260_vm0, %v532_v24, %v533_v25  ;;  %v691_v30 = vsel %vm422_vm2, %v689_v26, %v690_v27 }
 0x11a   : > { %1092 = vmatmul.mubr.msk.f32.vlgmr.msra.gmra.mxu1 %vm535_vm4, %v534_v29  ;;  %1130 = vmatmul.mubr.msk.f32.vlgmr.msra.gmra.mxu0 %vm535_vm4, %v691_v30 }
 0x11b   : > { %1095 = vmatpush3.msra.mxu1 %v520_v28  ;;  %1110 = vmatprep.mubr.msk.f32.mxu1 %vm1151_vm1, %v1150_v2 }
 0x11c   : > { %1096 = vmatprep.subr.mxu1 %v1150_v2 }
 0x11d   : > { %1097 = vmatpush3.msra.mxu1 %v519_v31 }
 0x11e   : > { %1098 = vmatprep.subr.mxu1 %v1150_v2 }
 0x11f   : > { %1099 = vmatpush3.msra.mxu1 %v518_v32 }
 0x120   : > { %1100 = vmatprep.subr.mxu1 %v1150_v2 }
 0x121   : > { %1101 = vmatpush3.msra.mxu1 %v517_v33 }
 0x122   : > { %1102 = vmatprep.subr.mxu1 %v1150_v2 }
 0x123   : > { %1103 = vmatpush3.msra.mxu1 %v516_v34 }
 0x124   : > { %1104 = vmatprep.subr.mxu1 %v1150_v2 }
 0x125   : > { %1105 = vmatpush3.msra.mxu1 %v515_v35 }
 0x126   : > { %1106 = vmatprep.subr.mxu1 %v1150_v2 }
 0x127   : > { %1107 = vmatpush3.msra.mxu1 %v514_v36 }
 0x128   : > { %1108 = vmatprep.subr.mxu1 %v1150_v2 }
 0x129   : > { %1109 = vmatpush3.msra.mxu1 %v513_v37 }
 0x12a   : > { %1111 = vmatmul.mubr.msk.f32.vlgmr.msra.gmra.mxu1 %vm535_vm4, %v511_v22 }
 0x1da   : > { %v604_v38 = vpop.f32.mrf.mxu1  ;;  %v760_v39 = vpop.f32.mrf.mxu0 }
 0x1dc   : > { %v1093_v40 = vpop.f32.mrf.mxu1  ;;  %v1131_v41 = vpop.f32.mrf.mxu0 }
 0x1ea   : > { %v676_v42 = vpop.f32.mrf.mxu1 }
 0x1eb   : > { %v677_v43 = vadd.f32 %v676_v42, %v604_v38 }
 0x1ec   : > { %v1112_v45 = vpop.f32.mrf.mxu1 }
 0x1ed   : > { %v764_v46 = vadd.f32 %v760_v39, %v677_v43 }
 0x1ef   : > { %v772_v47 = vadd.f32 %v888_v44, %v764_v46 }
 0x1f1   : > { %v773_v2 = vmax.f32 %v772_v47, 0.0 }
 0x1f3   : > { %774 = vst [vmem:[%s222_s12] sm:$0xff] %v773_v2 }
 0x1f4 PF: > { %s15_s18 = sadd.s32 1, %s1148_s18  }
 0x1f5   : > { %p12_p4 = scmp.ge.s32.totalorder %s15_s18, 4  }
 0x1f7   :  { %14 = sbr.rel (!%p12_p4) target bundleno = 1 (0x1), region = 74 }

// kernel: audio_expert_forward.5
= control target key start
LH: loop header
LB: loop body
LE: loop exit
PB: predicated region body
PF: predicated region fallthrough
CT: control target
= control target key end

     0   :  { %12 = vsyncpa [#allocation7], 0  ;;  %s1806_s0 = inlined_call_operand.vmem [shape: f32[2,8,128], index: 0, kind: input, shape index: {}]   ;;  %s1807_s1 = inlined_call_operand.vmem [shape: f32[128,256], index: 1, kind: input, shape index: {}]   ;;  %s1808_s2 = inlined_call_operand.vmem [shape: f32[64,256], index: 2, kind: input, shape index: {}]   ;;  %s1809_s3 = inlined_call_operand.vmem [shape: f32[1,256], index: 3, kind: input, shape index: {}]   ;;  %s1810_s4 = inlined_call_operand.vmem [shape: f32[128,256], index: 4, kind: input, shape index: {}]   ;;  %s1811_s5 = inlined_call_operand.vmem [shape: f32[64,256], index: 5, kind: input, shape index: {}]   ;;  %s1812_s6 = inlined_call_operand.vmem [shape: f32[1,256], index: 6, kind: input, shape index: {}]   ;;  %s1813_s7 = inlined_call_operand.hbm [shape: f32[2,8,128], index: 7, kind: output, shape index: {}]  }
   0x1   :  { %14 = vsyncpa [#allocation7 + $0x1], 0  ;;  %s1246_s24 = smov 0   ;;  %s1248_s25 = smov 0  }
   0x2   :  { %s1250_s26 = smov 0   ;;  %s1252_s27 = smov 0  }
   0x3 LB: > { %s1267_s28 = sadd.s32 4294967295, %s1172_s27   ;;  %s948_s29 = sadd.s32 4294967294, %s1172_s27   ;;  %s1172_s27 = sphi %s1252_s27, %s1819_s27   ;;  %s1168_s26 = sphi %s1250_s26, %s1818_s26   ;;  %s1164_s25 = sphi %s1248_s25, %s1817_s25   ;;  %s1160_s24 = sphi %s1246_s24, %s1816_s24  }
   0x4   : > { %s1271_s30 = sadd.s32 1, %s1172_s27   ;;  %s179_s8 = sadd.s32 1, %s1168_s26 }
   0x5   : > { %s176_s9 = ssub.s32 %s1172_s27, %s1271_s30  ;;  %p189_p0 = scmp.ne.s32.totalorder %s1168_s26, %s1164_s25 }
   0x6   : > { %p177_p1 = scmp.eq.s32.totalorder %s176_s9, 0  ;;  %p190_p2 = scmp.eq.s32.totalorder %s1267_s28, 1 }
   0x7   : > { %p195_p3 = scmp.ne.s32.totalorder %s1164_s25, %s1160_s24  ;;  %p196_p4 = scmp.eq.s32.totalorder %s948_s29, 1 }
   0x8   : > { %s1282_s10 = scalar_select %p177_p1, %s1168_s26, %s179_s8  }
   0x9   : > { %p1284_p5 = por %p190_p2, %p189_p0  ;;  %p1288_p6 = por %p196_p4, %p195_p3 }
   0xa   : > { %p951_p7 = scmp.ge.s32.totalorder %s1172_s27, 1  ;;  %p239_p8 = scmp.lt.s32.totalorder %s1172_s27, 3 }
   0xc   : > { %p240_p9 = pnand %p951_p7, %p239_p8 }
   0xd   : > { %s267_s13 = sand.u32 (!%p240_p9), 1, %s1164_s25   ;;  %p270_p10 = scmp.lt.s32.totalorder (!%p240_p9), %s1267_s28, 1 }
   0xe   : > { %243 = sbr.rel (%p240_p9) target bundleno = 1392 (0x570), region = 48  ;;  %s1306_s20 = sshll.u32 (!%p240_p9), %s267_s13, 3 }
   0xf   : > { %s269_s9 = scalar_lea.vmem (!%p240_p9), [#allocation6], %s1306_s20  ;;  %s1676_s15 = smov (!%p240_p9), 0  }
  0x13   : > { %v306_v0 = vld [vmem:[%s1807_s1 + $0xf8] sm:$0xff]  ;;  %v305_v2 = vld [vmem:[%s1807_s1 + $0xf0] sm:$0xff]  ;;  %v304_v4 = vld [vmem:[%s1807_s1 + $0xe8] sm:$0xff]  ;;  %s1447_s14 = scalar_select %p270_p10, %s1267_s28, 1 }
  0x14   : > { %v423_v1 = vld [vmem:[%s1810_s4 + $0xf8] sm:$0xff]  ;;  %319 = vmatprep.subr.mxu0 %v306_v0  ;;  %v422_v3 = vld [vmem:[%s1810_s4 + $0xf0] sm:$0xff]  ;;  %v421_v5 = vld [vmem:[%s1810_s4 + $0xe8] sm:$0xff] }
  0x15   : > { %436 = vmatprep.subr.mxu1 %v423_v1  ;;  %320 = vmatpush1.msra.mxu0 %v305_v2  ;;  %v303_v6 = vld [vmem:[%s1807_s1 + $0xe0] sm:$0xff]  ;;  %v302_v8 = vld [vmem:[%s1807_s1 + $0xd8] sm:$0xff]  ;;  %v301_v10 = vld [vmem:[%s1807_s1 + $0xd0] sm:$0xff]  ;;  %s953_s21 = sshll.u32 %s1447_s14, 3  ;;  %v1198_v1 = vmov 0.0  }
  0x16   : > { %437 = vmatpush1.msra.mxu1 %v422_v3  ;;  %v420_v7 = vld [vmem:[%s1810_s4 + $0xe0] sm:$0xff]  ;;  %321 = vmatprep.subr.mxu0 %v304_v4  ;;  %v419_v9 = vld [vmem:[%s1810_s4 + $0xd8] sm:$0xff]  ;;  %v418_v11 = vld [vmem:[%s1810_s4 + $0xd0] sm:$0xff]  ;;  %s273_s8 = scalar_lea.vmem %s1806_s0, %s953_s21 }
  0x17   : > { %438 = vmatprep.subr.mxu1 %v421_v5  ;;  %322 = vmatpush1.msra.mxu0 %v303_v6  ;;  %v300_v12 = vld [vmem:[%s1807_s1 + $0xc8] sm:$0xff]  ;;  %v299_v14 = vld [vmem:[%s1807_s1 + $0xc0] sm:$0xff]  ;;  %v298_v16 = vld [vmem:[%s1807_s1 + $0xb8] sm:$0xff] }
  0x18   : > { %439 = vmatpush1.msra.mxu1 %v420_v7  ;;  %v417_v13 = vld [vmem:[%s1810_s4 + $0xc8] sm:$0xff]  ;;  %323 = vmatprep.subr.mxu0 %v302_v8  ;;  %v416_v15 = vld [vmem:[%s1810_s4 + $0xc0] sm:$0xff]  ;;  %v415_v17 = vld [vmem:[%s1810_s4 + $0xb8] sm:$0xff] }
  0x19   : > { %440 = vmatprep.subr.mxu1 %v419_v9  ;;  %324 = vmatpush1.msra.mxu0 %v301_v10  ;;  %v297_v18 = vld [vmem:[%s1807_s1 + $0xb0] sm:$0xff]  ;;  %v296_v20 = vld [vmem:[%s1807_s1 + $0xa8] sm:$0xff]  ;;  %v295_v22 = vld [vmem:[%s1807_s1 + $0xa0] sm:$0xff] }
  0x1a   : > { %441 = vmatpush1.msra.mxu1 %v418_v11  ;;  %325 = vmatprep.subr.mxu0 %v300_v12  ;;  %v414_v19 = vld [vmem:[%s1810_s4 + $0xb0] sm:$0xff]  ;;  %v413_v21 = vld [vmem:[%s1810_s4 + $0xa8] sm:$0xff]  ;;  %v412_v23 = vld [vmem:[%s1810_s4 + $0xa0] sm:$0xff] }
  0x1b   : > { %442 = vmatprep.subr.mxu1 %v417_v13  ;;  %326 = vmatpush1.msra.mxu0 %v299_v14  ;;  %v294_v24 = vld [vmem:[%s1807_s1 + $0x98] sm:$0xff]  ;;  %v293_v26 = vld [vmem:[%s1807_s1 + $0x90] sm:$0xff]  ;;  %v292_v28 = vld [vmem:[%s1807_s1 + $0x88] sm:$0xff] }
  0x1c   : > { %443 = vmatpush1.msra.mxu1 %v416_v15  ;;  %327 = vmatprep.subr.mxu0 %v298_v16  ;;  %v411_v25 = vld [vmem:[%s1810_s4 + $0x98] sm:$0xff]  ;;  %v410_v27 = vld [vmem:[%s1810_s4 + $0x90] sm:$0xff]  ;;  %v409_v29 = vld [vmem:[%s1810_s4 + $0x88] sm:$0xff] }
  0x1d   : > { %444 = vmatprep.subr.mxu1 %v415_v17  ;;  %328 = vmatpush1.msra.mxu0 %v297_v18  ;;  %v291_v30 = vld [vmem:[%s1807_s1 + $0x80] sm:$0xff]  ;;  %v290_v32 = vld [vmem:[%s1807_s1 + $0x78] sm:$0xff]  ;;  %v289_v34 = vld [vmem:[%s1807_s1 + $0x70] sm:$0xff] }
  0x1e   : > { %445 = vmatpush1.msra.mxu1 %v414_v19  ;;  %329 = vmatprep.subr.mxu0 %v296_v20  ;;  %v408_v31 = vld [vmem:[%s1810_s4 + $0x80] sm:$0xff]  ;;  %v407_v33 = vld [vmem:[%s1810_s4 + $0x78] sm:$0xff]  ;;  %v406_v35 = vld [vmem:[%s1810_s4 + $0x70] sm:$0xff] }
  0x1f   : > { %446 = vmatprep.subr.mxu1 %v413_v21  ;;  %330 = vmatpush1.msra.mxu0 %v295_v22  ;;  %v288_v36 = vld [vmem:[%s1807_s1 + $0x68] sm:$0xff]  ;;  %v287_v38 = vld [vmem:[%s1807_s1 + $0x60] sm:$0xff]  ;;  %v286_v40 = vld [vmem:[%s1807_s1 + $0x58] sm:$0xff] }
  0x20   : > { %447 = vmatpush1.msra.mxu1 %v412_v23  ;;  %331 = vmatprep.subr.mxu0 %v294_v24  ;;  %v405_v37 = vld [vmem:[%s1810_s4 + $0x68] sm:$0xff]  ;;  %v404_v39 = vld [vmem:[%s1810_s4 + $0x60] sm:$0xff]  ;;  %v403_v41 = vld [vmem:[%s1810_s4 + $0x58] sm:$0xff] }
  0x21   : > { %448 = vmatprep.subr.mxu1 %v411_v25  ;;  %332 = vmatpush1.msra.mxu0 %v293_v26  ;;  %v285_v42 = vld [vmem:[%s1807_s1 + $0x50] sm:$0xff]  ;;  %v284_v44 = vld [vmem:[%s1807_s1 + $0x48] sm:$0xff]  ;;  %v283_v46 = vld [vmem:[%s1807_s1 + $0x40] sm:$0xff] }
  0x22   : > { %449 = vmatpush1.msra.mxu1 %v410_v27  ;;  %333 = vmatprep.subr.mxu0 %v292_v28  ;;  %v402_v43 = vld [vmem:[%s1810_s4 + $0x50] sm:$0xff]  ;;  %v401_v45 = vld [vmem:[%s1810_s4 + $0x48] sm:$0xff]  ;;  %v400_v47 = vld [vmem:[%s1810_s4 + $0x40] sm:$0xff] }
  0x23   : > { %450 = vmatprep.subr.mxu1 %v409_v29  ;;  %334 = vmatpush1.msra.mxu0 %v291_v30  ;;  %v282_v48 = vld [vmem:[%s1807_s1 + $0x38] sm:$0xff]  ;;  %v281_v50 = vld [vmem:[%s1807_s1 + $0x30] sm:$0xff]  ;;  %v280_v52 = vld [vmem:[%s1807_s1 + $0x28] sm:$0xff] }
  0x24   : > { %451 = vmatpush1.msra.mxu1 %v408_v31  ;;  %335 = vmatprep.subr.mxu0 %v290_v32  ;;  %v399_v49 = vld [vmem:[%s1810_s4 + $0x38] sm:$0xff]  ;;  %v398_v51 = vld [vmem:[%s1810_s4 + $0x30] sm:$0xff]  ;;  %v397_v53 = vld [vmem:[%s1810_s4 + $0x28] sm:$0xff] }
  0x25   : > { %452 = vmatprep.subr.mxu1 %v407_v33  ;;  %336 = vmatpush1.msra.mxu0 %v289_v34  ;;  %v279_v54 = vld [vmem:[%s1807_s1 + $0x20] sm:$0xff]  ;;  %v278_v56 = vld [vmem:[%s1807_s1 + $0x18] sm:$0xff]  ;;  %v277_v58 = vld [vmem:[%s1807_s1 + $0x10] sm:$0xff]  ;;  %v309_v34 = vlaneseq }
  0x26   : > { %453 = vmatpush1.msra.mxu1 %v406_v35  ;;  %337 = vmatprep.subr.mxu0 %v288_v36  ;;  %v396_v55 = vld [vmem:[%s1810_s4 + $0x20] sm:$0xff]  ;;  %v395_v57 = vld [vmem:[%s1810_s4 + $0x18] sm:$0xff]  ;;  %v394_v59 = vld [vmem:[%s1810_s4 + $0x10] sm:$0xff] }
  0x27   : > { %454 = vmatprep.subr.mxu1 %v405_v37  ;;  %338 = vmatpush1.msra.mxu0 %v287_v38  ;;  %v276_v60 = vld [vmem:[%s1807_s1 + $0x8] sm:$0xff]  ;;  %v275_v62 = vld [vmem:[%s1807_s1] sm:$0xff]  ;;  %v1514_v4 = vld [vmem:[%s1808_s2 + $0x10] sm:$0xff]  ;;  %v1661_v35 = vshrl.u32 %v309_v34, 7 }
  0x28   : > { %455 = vmatpush1.msra.mxu1 %v404_v39  ;;  %339 = vmatprep.subr.mxu0 %v286_v40  ;;  %v393_v61 = vld [vmem:[%s1810_s4 + $0x8] sm:$0xff]  ;;  %v392_v63 = vld [vmem:[%s1810_s4] sm:$0xff]  ;;  %v1519_v5 = vld [vmem:[%s1808_s2 + $0x18] sm:$0xff] }
  0x29   : > { %456 = vmatprep.subr.mxu1 %v403_v41  ;;  %340 = vmatpush1.msra.mxu0 %v285_v42  ;;  %v274_v0 = vld [vmem:[%s273_s8] sm:$0xff]  ;;  %v1509_v3 = vld [vmem:[%s1808_s2 + $0x8] sm:$0xff]  ;;  %v1534_v8 = vld [vmem:[%s1808_s2 + $0x30] sm:$0xff]  ;;  %v311_v36 = vsub.s32 0, %v1661_v35  ;;  %v315_v39 = vsub.s32 1, %v1661_v35 }
  0x2a   : > { %457 = vmatpush1.msra.mxu1 %v402_v43  ;;  %341 = vmatprep.subr.mxu0 %v284_v44  ;;  %v1504_v2 = vld [vmem:[%s1808_s2] sm:$0xff]  ;;  %v1529_v7 = vld [vmem:[%s1808_s2 + $0x28] sm:$0xff]  ;;  %v1539_v9 = vld [vmem:[%s1808_s2 + $0x38] sm:$0xff] }
  0x2b   : > { %458 = vmatprep.subr.mxu1 %v401_v45  ;;  %342 = vmatpush1.msra.mxu0 %v283_v46  ;;  %v1524_v6 = vld [vmem:[%s1808_s2 + $0x20] sm:$0xff]  ;;  %v1549_v11 = vld [vmem:[%s1808_s2 + $0x48] sm:$0xff]  ;;  %v1554_v12 = vld [vmem:[%s1808_s2 + $0x50] sm:$0xff] }
  0x2c   : > { %459 = vmatpush1.msra.mxu1 %v400_v47  ;;  %343 = vmatprep.subr.mxu0 %v282_v48  ;;  %v1544_v10 = vld [vmem:[%s1808_s2 + $0x40] sm:$0xff]  ;;  %v1559_v13 = vld [vmem:[%s1808_s2 + $0x58] sm:$0xff]  ;;  %v1569_v15 = vld [vmem:[%s1808_s2 + $0x68] sm:$0xff] }
  0x2d   : > { %460 = vmatprep.subr.mxu1 %v399_v49  ;;  %344 = vmatpush1.msra.mxu0 %v281_v50  ;;  %v1564_v14 = vld [vmem:[%s1808_s2 + $0x60] sm:$0xff]  ;;  %v1574_v16 = vld [vmem:[%s1808_s2 + $0x70] sm:$0xff]  ;;  %v1579_v17 = vld [vmem:[%s1808_s2 + $0x78] sm:$0xff] }
  0x2e   : > { %461 = vmatpush1.msra.mxu1 %v398_v51  ;;  %345 = vmatprep.subr.mxu0 %v280_v52  ;;  %v1584_v18 = vld [vmem:[%s1811_s5] sm:$0xff]  ;;  %v1589_v19 = vld [vmem:[%s1811_s5 + $0x8] sm:$0xff]  ;;  %v1594_v20 = vld [vmem:[%s1811_s5 + $0x10] sm:$0xff]  ;;  %v1672_v52 = vmov 0.0  }
  0x2f   : > { %462 = vmatprep.subr.mxu1 %v397_v53  ;;  %346 = vmatpush1.msra.mxu0 %v279_v54  ;;  %v1599_v21 = vld [vmem:[%s1811_s5 + $0x18] sm:$0xff]  ;;  %v1604_v22 = vld [vmem:[%s1811_s5 + $0x20] sm:$0xff]  ;;  %v1609_v23 = vld [vmem:[%s1811_s5 + $0x28] sm:$0xff]  ;;  %v1674_v53 = vmov 0.0  }
  0x30   : > { %463 = vmatpush1.msra.mxu1 %v396_v55  ;;  %347 = vmatprep.subr.mxu0 %v278_v56  ;;  %v1614_v24 = vld [vmem:[%s1811_s5 + $0x30] sm:$0xff]  ;;  %v1619_v25 = vld [vmem:[%s1811_s5 + $0x38] sm:$0xff]  ;;  %v1624_v26 = vld [vmem:[%s1811_s5 + $0x40] sm:$0xff] }
  0x31   : > { %464 = vmatprep.subr.mxu1 %v395_v57  ;;  %348 = vmatpush1.msra.mxu0 %v277_v58  ;;  %v1629_v27 = vld [vmem:[%s1811_s5 + $0x48] sm:$0xff]  ;;  %v1634_v28 = vld [vmem:[%s1811_s5 + $0x50] sm:$0xff]  ;;  %v1639_v29 = vld [vmem:[%s1811_s5 + $0x58] sm:$0xff] }
  0x32   : > { %465 = vmatpush1.msra.mxu1 %v394_v59  ;;  %349 = vmatprep.subr.mxu0 %v276_v60  ;;  %v1644_v30 = vld [vmem:[%s1811_s5 + $0x60] sm:$0xff]  ;;  %v1649_v31 = vld [vmem:[%s1811_s5 + $0x68] sm:$0xff]  ;;  %v1654_v32 = vld [vmem:[%s1811_s5 + $0x70] sm:$0xff] }
  0x33   : > { %466 = vmatprep.subr.mxu1 %v393_v61  ;;  %350 = vmatpush1.msra.mxu0 %v275_v62  ;;  %v1659_v33 = vld [vmem:[%s1811_s5 + $0x78] sm:$0xff]  ;;  %v307_v37 = vld [vmem:[%s1809_s3] sm:$0x3] }
  0x34   : > { %383 = vmatprep.mubr.f32.mxu0 %v1198_v1  ;;  %467 = vmatpush1.msra.mxu1 %v392_v63  ;;  %v424_v38 = vld [vmem:[%s1812_s6] sm:$0x3]  ;;  %v312_v40 = vrot.slane %v307_v37, %v311_v36  ;;  %v316_v42 = vrot.slane %v307_v37, %v315_v39 }
  0x35   : > { %500 = vmatprep.mubr.f32.mxu1 %v1198_v1  ;;  %384 = vmatmul.mubr.f32.vlgmr.msra.gmra.mxu0 %v274_v0  ;;  %v429_v41 = vrot.slane %v424_v38, %v311_v36  ;;  %v433_v43 = vrot.slane %v424_v38, %v315_v39 }
  0x36   : > { %501 = vmatmul.mubr.f32.vlgmr.msra.gmra.mxu1 %v274_v0 }
  0xf5   : > { %v385_v44 = vpop.f32.mrf.mxu0 }
  0xf6   : > { %v502_v45 = vpop.f32.mrf.mxu1  ;;  %v386_v46 = vadd.f32 %v385_v44, %v312_v40 }
  0xf7   : > { %v503_v47 = vadd.f32 %v502_v45, %v429_v41  ;;  %v387_v48 = vpop.f32.mrf.mxu0 }
  0xf8   : > { %v504_v49 = vpop.f32.mrf.mxu1  ;;  %390 = vst [vmem:[#allocation2] sm:$0xff] %v386_v46  ;;  %v388_v50 = vadd.f32 %v387_v48, %v316_v42 }
  0xf9   : > { %507 = vst [vmem:[#allocation3] sm:$0xff] %v503_v47  ;;  %v505_v51 = vadd.f32 %v504_v49, %v433_v43 }
  0xfa   : > { %391 = vst [vmem:[#allocation2 + $0x8] sm:$0xff] %v388_v50 }
  0xfb   : > { %508 = vst [vmem:[#allocation3 + $0x8] sm:$0xff] %v505_v51 }
  0xfc LB: >> { %578 = vmatprep.subr.mxu0 %v1579_v17  ;;  %v1199_v54 = vmov 0.0   ;;  %vm558_vm0 = vcmask 523264   ;;  %v1200_v55 = vmov 1966171168   ;;  %s549_s16 = sshra.s32 %s1184_s15, 3  ;;  %s552_s17 = sand.u32 7, %s1184_s15  ;;  %s1184_s15 = sphi %s1676_s15, %s546_s15   ;;  %v1180_v53 = vphi %v1674_v53, %v684_v53   ;;  %v1176_v52 = vphi %v1672_v52, %v678_v52  }
  0xfd   : >> { %579 = vmatpush1.msra.mxu0 %v1574_v16  ;;  %626 = vmatprep.mubr.f32.mxu0 %v1199_v54  ;;  %v637_v56 = vunpack.c.l.s4 %v1200_v55  ;;  %s968_s21 = sshll.u32 %s549_s16, 4  ;;  %s1201_s19 = smov 64   ;;  %vm686_vm1 = vcmask 516096  }
  0xfe   : >> { %580 = vmatprep.subr.mxu0 %v1569_v15  ;;  %s555_s14 = sadd.s32 %s968_s21, %s552_s17  ;;  %s685_s22 = scalar_lea.vmem [#allocation4], %s1184_s15 }
  0xff   : >> { %581 = vmatpush1.msra.mxu0 %v1564_v14  ;;  %v638_v57 = vunpack.c.0.s8 %v637_v56  ;;  %s556_s18 = scalar_lea.vmem [#allocation2], %s555_s14  ;;  %s546_s15 = sadd.s32 1, %s1184_s15  }
 0x100   : >> { %582 = vmatprep.subr.mxu0 %v1559_v13  ;;  %p543_p11 = scmp.ge.s32.totalorder %s546_s15, 8  }
 0x101   : >> { %583 = vmatpush1.msra.mxu0 %v1554_v12  ;;  %v1703_v59 = vsub.s32 %v638_v57, %v1661_v35  ;;  %v557_v63 = vld [vmem:[%s556_s18] ss:$8 sm:$0x3]  ;;  %v1716_v54 = vmov (%p543_p11), 0.0   ;;  %v1718_v55 = vmov (%p543_p11), 0.0   ;;  %s1720_s23 = smov (%p543_p11), 0  }
 0x102   : >> { %584 = vmatprep.subr.mxu0 %v1549_v11 }
 0x103   : >> { %585 = vmatpush1.msra.mxu0 %v1544_v10 }
 0x104   : >> { %586 = vmatprep.subr.mxu0 %v1539_v9 }
 0x105   : >> { %587 = vmatpush1.msra.mxu0 %v1534_v8 }
 0x106   : >> { %588 = vmatprep.subr.mxu0 %v1529_v7 }
 0x107   : >> { %589 = vmatpush1.msra.mxu0 %v1524_v6 }
 0x108   : >> { %590 = vmatprep.subr.mxu0 %v1519_v5 }
 0x109   : >> { %591 = vmatpush1.msra.mxu0 %v1514_v4 }
 0x10a   : >> { %592 = vmatprep.subr.mxu0 %v1509_v3 }
 0x10b   : >> { %593 = vmatpush1.msra.mxu0 %v1504_v2 }
 0x10c   : >> { %956 = vmatmul.mubr.msk.f32.vlgmr.msra.gmra.mxu0 %vm558_vm0, %v1180_v53 }
 0x1cc   : >> { %v628_v58 = vpop.f32.mrf.mxu0 }
 0x1ce   : >> { %v630_v60 = vpop.f32.mrf.mxu0 }
 0x1cf   : >> { %v635_v61 = vcombine.low %v628_v58, %v630_v60 }
 0x1d1   : >> { %v642_v62 = vrot.slane %v635_v61, %v1703_v59 }
 0x1d3   : >> { %v649_v0 = vrot.slane %v642_v62, %v1703_v59 }
 0x1d5   : >> { %v651_v1 = vadd.f32 %v649_v0, %v557_v63 }
 0x1d7   : >> { %v957_v34 = vmul.f32 -1.442695, %v651_v1  ;;  %v659_v36 = vrot.slane %v651_v1, 1 }
 0x1d9   : >> { %1064 = vpow2.f32 %v957_v34 }
 0x1da   : >> { %1066 = vtanh.f32 %v659_v36 }
 0x1e6   : >> { %v1065_v37 = vpop.eup %1064 }
 0x1e7   : >> { %v655_v38 = vadd.f32 1.0, %v1065_v37  ;;  %v1067_v39 = vpop.eup %1066 }
 0x1e9   : >> { %1068 = vrcp.f32 %v655_v38 }
 0x1f6   : >> { %v1069_v40 = vpop.eup %1068 }
 0x1f7   : >> { %v673_v41 = vmul.f32 %v1069_v40, %v1067_v39  ;;  %v672_v42 = vmul.f32 %v1176_v52, %v1069_v40 }
 0x1f9   : >> { %675 = vrot.lane.b32.xlu0 %v673_v41, %s1201_s19 }
 0x1fd   : >> { %662 = vrot.lane.b32.xlu0 %v651_v1, %s1201_s19 }
 0x26b   : >> { %v676_v43 = vpop.permute.xlu0 %675 }
 0x26c   : >> { %v678_v52 = vadd.f32 %v676_v43, %v672_v42  }
 0x26e   : >> { %1070 = vtanh.f32 %v678_v52 }
 0x26f   : >> { %v663_v45 = vpop.permute.xlu0 %662 }
 0x270   : >> { %v664_v46 = vrot.slane %v663_v45, 1 }
 0x272   : >> { %v958_v47 = vmul.f32 -1.442695, %v664_v46 }
 0x274   : >> { %1072 = vpow2.f32 %v958_v47 }
 0x27b   : >> { %v1071_v44 = vpop.eup %1070 }
 0x27c   : >> { %681 = vrot.lane.b32.xlu1 %v1071_v44, %s1201_s19 }
 0x281   : >> { %v1073_v48 = vpop.eup %1072 }
 0x282   : >> { %v669_v49 = vadd.f32 1.0, %v1073_v48 }
 0x284   : >> { %1074 = vrcp.f32 %v669_v49 }
 0x291   : >> { %v1075_v50 = vpop.eup %1074 }
 0x2ed   : > { %545 = sbr.rel (!%p543_p11) target bundleno = 252 (0xfc), region = 101 }
 0x2ee   : >> { %v682_v51 = vpop.permute.xlu1 %681 }
 0x2ef   : >> { %v684_v53 = vmul.f32 %v1075_v50, %v682_v51  }
 0x2f1   : >> { %687 = vst.msk [vmem:[%s685_s22] sm:$0x1] %vm686_vm1, %v684_v53 }
 0x2f2 LB: >> { %726 = vmatprep.subr.mxu0 %v1659_v33  ;;  %v1202_v53 = vmov 0.0   ;;  %s1745_s29 = ssub.s32 7, %s1196_s23  ;;  %s1203_s14 = smov 64   ;;  %s1196_s23 = sphi %s1720_s23, %s693_s23   ;;  %v1192_v55 = vphi %v1718_v55, %v832_v55   ;;  %v1188_v54 = vphi %v1716_v54, %v826_v54  }
 0x2f3   : >> { %727 = vmatpush1.msra.mxu0 %v1654_v32  ;;  %774 = vmatprep.mubr.f32.mxu0 %v1202_v53  ;;  %s697_s8 = sshra.s32 %s1745_s29, 3  ;;  %s700_s15 = sand.u32 7, %s1745_s29 }
 0x2f4   : >> { %728 = vmatprep.subr.mxu0 %v1649_v31  ;;  %s969_s16 = sshll.u32 %s697_s8, 4  ;;  %s833_s18 = scalar_lea.vmem [#allocation5], %s1745_s29 }
 0x2f5   : >> { %729 = vmatpush1.msra.mxu0 %v1644_v30  ;;  %s703_s17 = sadd.s32 %s969_s16, %s700_s15  ;;  %s693_s23 = sadd.s32 1, %s1196_s23  }
 0x2f6   : >> { %730 = vmatprep.subr.mxu0 %v1639_v29  ;;  %s704_s21 = scalar_lea.vmem [#allocation3], %s703_s17  ;;  %p690_p12 = scmp.ge.s32.totalorder %s693_s23, 8  }
 0x2f7   : >> { %731 = vmatpush1.msra.mxu0 %v1634_v28  ;;  %v705_v6 = vld [vmem:[%s704_s21] ss:$8 sm:$0x3]  ;;  %s1204_s19 = smov (%p690_p12), 64   ;;  %s965_s22 = sshll.u32 (%p690_p12), %s1267_s28, 7 }
 0x2f8   : >> { %732 = vmatprep.subr.mxu0 %v1629_v27  ;;  %s859_s29 = sshll.u32 (%p690_p12), %s269_s9, 4  ;;  %v836_v0 = vld [vmem:[#allocation4] sm:$0xff] (%p690_p12)  ;;  %s1766_s16 = scalar_lea.hbm (%p690_p12), %s1813_s7, %s965_s22  ;;  %s860_s29 = int_to_ptr.vmem [resolvable:$true] %s859_s29 }
 0x2f9   : >> { %733 = vmatpush1.msra.mxu0 %v1624_v26  ;;  %s846_s23 = scalar_lea.sflag (%p690_p12), [#allocation7], %s267_s13  ;;  %s1088_s17 = scalar_lea.vmem (%p690_p12), %s860_s29, 128 }
 0x2fa   : >> { %734 = vmatprep.subr.mxu0 %v1619_v25  ;;  %p1089_p13 = scmp.ne.s32.totalorder (%p690_p12), %s860_s29, %s1088_s17  ;;  %s1205_s28 = smov (%p690_p12), [#allocation6]  }
 0x2fb   : >> { %735 = vmatpush1.msra.mxu0 %v1614_v24  ;;  %s1092_s21 = sshll.u32 (%p690_p12), %s1205_s28, 4  ;;  %s1093_s21 = int_to_ptr.vmem [resolvable:$false] %s1092_s21 }
 0x2fc   : >> { %736 = vmatprep.subr.mxu0 %v1609_v23  ;;  %p1090_p0 = pnand (%p690_p12), %p1089_p13, %p1284_p5  ;;  %p1095_p2 = scmp.lt.s32.totalorder (%p690_p12), %s860_s29, %s1093_s21 }
 0x2fd   : >> { %737 = vmatpush1.msra.mxu0 %v1604_v22 }
 0x2fe   : >> { %738 = vmatprep.subr.mxu0 %v1599_v21  ;;  %p1091_p1 = pneg (%p690_p12), %p1090_p0 }
 0x2ff   : >> { %739 = vmatpush1.msra.mxu0 %v1594_v20 }
 0x300   : >> { %740 = vmatprep.subr.mxu0 %v1589_v19 }
 0x301   : >> { %741 = vmatpush1.msra.mxu0 %v1584_v18 }
 0x302   : >> { %961 = vmatmul.mubr.msk.f32.vlgmr.msra.gmra.mxu0 %vm558_vm0, %v1192_v55 }
 0x3c2   : >> { %v776_v2 = vpop.f32.mrf.mxu0 }
 0x3c4   : >> { %v778_v3 = vpop.f32.mrf.mxu0 }
 0x3c5   : >> { %v783_v4 = vcombine.low %v776_v2, %v778_v3 }
 0x3c7   : >> { %v790_v5 = vrot.slane %v783_v4, %v1703_v59 }
 0x3c9   : >> { %v797_v7 = vrot.slane %v790_v5, %v1703_v59 }
 0x3cb   : >> { %v799_v8 = vadd.f32 %v797_v7, %v705_v6 }
 0x3cd   : >> { %v962_v9 = vmul.f32 -1.442695, %v799_v8  ;;  %v807_v10 = vrot.slane %v799_v8, 1 }
 0x3cf   : >> { %1076 = vpow2.f32 %v962_v9 }
 0x3d0   : >> { %1078 = vtanh.f32 %v807_v10 }
 0x3dc   : >> { %v1077_v11 = vpop.eup %1076 }
 0x3dd   : >> { %v803_v12 = vadd.f32 1.0, %v1077_v11  ;;  %v1079_v13 = vpop.eup %1078 }
 0x3df   : >> { %1080 = vrcp.f32 %v803_v12 }
 0x3ec   : >> { %v1081_v14 = vpop.eup %1080 }
 0x3ed   : >> { %v821_v15 = vmul.f32 %v1081_v14, %v1079_v13  ;;  %v820_v16 = vmul.f32 %v1188_v54, %v1081_v14 }
 0x3ef   : >> { %823 = vrot.lane.b32.xlu0 %v821_v15, %s1203_s14 }
 0x3f3   : >> { %810 = vrot.lane.b32.xlu0 %v799_v8, %s1203_s14 }
 0x461   : >> { %v824_v17 = vpop.permute.xlu0 %823 }
 0x462   : >> { %v826_v54 = vadd.f32 %v824_v17, %v820_v16  }
 0x464   : >> { %1082 = vtanh.f32 %v826_v54 }
 0x465   : >> { %v811_v52 = vpop.permute.xlu0 %810 }
 0x466   : >> { %v812_v56 = vrot.slane %v811_v52, 1 }
 0x468   : >> { %v963_v57 = vmul.f32 -1.442695, %v812_v56 }
 0x46a   : >> { %1084 = vpow2.f32 %v963_v57 }
 0x471   : >> { %v1083_v35 = vpop.eup %1082 }
 0x472   : >> { %829 = vrot.lane.b32.xlu1 %v1083_v35, %s1203_s14  ;;  %s1094_s14 = scalar_lea.vmem (%p690_p12), %s1093_s21, 256 }
 0x473   : > { %p1096_p3 = scmp.lt.s32.totalorder (%p690_p12), %s1094_s14, %s1088_s17 }
 0x475   : > { %p1097_p4 = por (%p690_p12), %p1096_p3, %p1095_p2 }
 0x477   : >> { %v1085_v58 = vpop.eup %1084  ;;  %p1098_p7 = pnand (%p690_p12), %p1097_p4, %p1091_p1 }
 0x478   : >> { %v817_v60 = vadd.f32 1.0, %v1085_v58 }
 0x47a   : >> { %1086 = vrcp.f32 %v817_v60 }
 0x487   : >> { %v1087_v61 = vpop.eup %1086 }
 0x4e3   : > { %692 = sbr.rel (!%p690_p12) target bundleno = 754 (0x2f2), region = 112 }
 0x4e4   : >> { %v830_v62 = vpop.permute.xlu1 %829 }
 0x4e5   : >> { %v832_v55 = vmul.f32 %v1087_v61, %v830_v62  }
 0x4e7   : >> { %835 = vst.msk [vmem:[%s833_s18] sm:$0x1] %vm686_vm1, %v832_v55 }
 0x4ee   : > { %v837_v63 = vld [vmem:[#allocation5] sm:$0xff] }
 0x4ef   : > { %839 = vrot.lane.b32.xlu0 %v837_v63, %s1204_s19 }
 0x561   : > { %v840_v1 = vpop.permute.xlu0 %839 }
 0x562   : > { %v843_v18 = vsel %vm558_vm0, %v836_v0, %v840_v1 }
 0x563   : > { %844 = vst [vmem:[%s269_s9] sm:$0xff] %v843_v18 }
 0x564   : > { %1101 = shalt.err (!%p1098_p7)
}
 0x565   : > { %s1102_s20 = scalar_lea.hbm %s1766_s16, 128  ;;  %s1106_s18 = scalar_lea.hbm %s1813_s7, 256 }
 0x566   : > { %p1103_p8 = scmp.ne.s32.totalorder %s1766_s16, %s1102_s20  ;;  %p1107_p11 = scmp.lt.s32.totalorder %s1766_s16, %s1813_s7 }
 0x567   : > { %p1108_p12 = scmp.lt.s32.totalorder %s1106_s18, %s1102_s20 }
 0x568   : > { %p1104_p9 = pnand %p1103_p8, %p1284_p5 }
 0x569   : > { %p1109_p13 = por %p1108_p12, %p1107_p11 }
 0x56a   : > { %p1105_p10 = pneg %p1104_p9 }
 0x56c   : > { %p1110_p0 = pnand %p1109_p13, %p1105_p10 }
 0x56e   : > { %1113 = shalt.err (!%p1110_p0)
}
 0x56f   : > { %970 = dma.vmem_to_hbm [thread:$0]  (%p1284_p5), %s860_s29, 128, %s1766_s16, %s846_s23  }
 0x570 PF: > { %p976_p1 = scmp.ge.s32.totalorder %s1172_s27, 2  ;;  %s871_s8 = sand.u32 1, %s1160_s24  }
 0x571   : > { %s872_s15 = scalar_lea.sflag [#allocation7], %s871_s8 }
 0x572   : > { %p973_p2 = pnand %p976_p1, %p1288_p6 }
 0x574   : > { %p974_p3 = pneg %p973_p2 }
 0x576   : > { %1155 = dma.done.wait (%p974_p3), %s872_s15, 128  }
 0x577   : > { %1157 = vsyncadd (%p974_p3), %s872_s15, 4294967168  ;;  %p17_p4 = scmp.ge.s32.totalorder %s1271_s30, 4   ;;  %s1816_s24 = smov %s1164_s25 }
 0x578   : > { %s1817_s25 = smov %s1168_s26  ;;  %s1818_s26 = smov %s1282_s10 }
 0x579   : > { %s1819_s27 = smov %s1271_s30  ;;  %19 = sbr.rel (!%p17_p4) target bundleno = 3 (0x3), region = 123 }
 0x57e   :  { %877 = vsyncpa [#allocation7], 1 }
 0x57f   :  { %879 = vsyncpa [#allocation7 + $0x1], 1 }

</bundles_post_ra>
